<compile_context>
chip_gen: v6e
topology: v6e:2x2x1
jax: 0.10.0
libtpu: 0.0.40
codegen_flags: <defaults>
</compile_context>

<pallas_src>
import functools

import jax
import jax.numpy as jnp
from jax.experimental import pallas as pl
from jax.experimental.pallas import tpu as pltpu


# ----------------------------- Pallas kernel ------------------------------- #

def _sem_window_attn_kernel(
    x_ref,       # (W_BLK*N, C) f32   window-partitioned token slab
    wq_ref,      # (C, K)  bf16       mlp_cls_q weight (pre-transposed)
    bq_ref,      # (1, K)  f32
    wk_ref,      # (C, K)  bf16       mlp_cls_k weight (pre-transposed)
    bk_ref,      # (1, K)  f32
    wv_ref,      # (C, C)  bf16       mlp_v weight (pre-transposed)
    bv_ref,      # (1, C)  f32
    wr_ref,      # (C, C)  bf16       mlp_res weight (pre-transposed)
    br_ref,      # (1, C)  f32
    gamma_ref,   # (1,)    f32        SMEM scalar
    seg_ref,     # (W_BLK*N, K) f32   out: class map (window order)
    feat_ref,    # (W_BLK*N, C) f32   out: gated feats (window order)
    *,
    n_tok,       # N = window_size**2 tokens per window (static)
):
    xf = x_ref[...]                                   # (R, C) f32
    cdt = wq_ref.dtype                                # compute dtype (bf16)
    xb = xf.astype(cdt)
    rows, C = xf.shape
    n_win = rows // n_tok
    K = wq_ref.shape[1]
    f32 = jnp.float32

    # Shared-weight projections: one big MXU matmul each over all windows.
    q = jnp.dot(xb, wq_ref[...], preferred_element_type=f32) + bq_ref[...]
    k = jnp.dot(xb, wk_ref[...], preferred_element_type=f32) + bk_ref[...]
    v = jnp.dot(xb, wv_ref[...], preferred_element_type=f32) + bv_ref[...]

    # seg output is the raw class-logit projection q (matches PyTorch module).
    seg_ref[...] = q.astype(seg_ref.dtype)

    # Per-window attention, batched over the window axis.  Tile-aligned
    # reshapes only (n_tok is a multiple of 8 sublanes).
    q3 = q.astype(cdt).reshape(n_win, n_tok, K)
    k3 = k.astype(cdt).reshape(n_win, n_tok, K)
    v3 = v.astype(cdt).reshape(n_win, n_tok, C)

    # Contract the class axis of both operands directly (no k.T via XLU).
    s = jnp.einsum("bnk,bmk->bnm", q3, k3, preferred_element_type=f32)
    s = s - jnp.max(s, axis=-1, keepdims=True)
    p = jnp.exp(s)
    p = p * pl.reciprocal(jnp.sum(p, axis=-1, keepdims=True), approx=True)

    o = jnp.einsum("bnm,bmc->bnc", p.astype(cdt), v3, preferred_element_type=f32)

    # Residual projection + gamma gate.  proj_drop (Dropout p=0.1) is identity
    # in eval mode.
    # TODO(synk): training-mode dropout not implemented (inference semantics).
    o2 = o.reshape(rows, C).astype(cdt)
    r = jnp.dot(o2, wr_ref[...], preferred_element_type=f32) + br_ref[...]
    gamma = gamma_ref[0]
    feat_ref[...] = (gamma * r + xf).astype(feat_ref.dtype)


# ------------------------------ JAX wrapper -------------------------------- #

def _choose_window_block(n_windows, n_tok, target_rows=256, min_steps=2):
    """Largest window batch whose token rows fit the target MXU M tile,
    preferring >= min_steps grid steps so both v7x TensorCores get work."""
    divisors = [d for d in range(1, n_windows + 1) if n_windows % d == 0]
    fits = [d for d in divisors if d * n_tok <= target_rows]
    if not fits:
        return 1
    pref = [d for d in fits if n_windows // d >= min_steps]
    return max(pref) if pref else max(fits)


def sem_window_attention(x, params, window_size, *, compute_dtype=jnp.bfloat16):
    """x: (B, H, W, C) f32 -> (seg_map (B,H,W,K), feat_map (B,H,W,C))."""
    B, H, W, C = x.shape
    ws = window_size
    assert H % ws == 0 and W % ws == 0
    K = params["wq"].shape[1]
    N = ws * ws

    # Window partition (plain JAX): (B,H,W,C) -> (nW*N, C) token slab with the
    # tokens of each window contiguous along the row axis.
    xw = x.reshape(B, H // ws, ws, W // ws, ws, C)
    xw = xw.transpose(0, 1, 3, 2, 4, 5).reshape(-1, C)
    n_win = (B * H * W) // N
    rows = n_win * N

    w_blk = _choose_window_block(n_win, N)
    grid = (n_win // w_blk,)
    blk_rows = w_blk * N

    # bf16 weights: halves weight DMA and hits the bf16 MXU path (f32 accum).
    cdt = compute_dtype
    wq = params["wq"].astype(cdt)
    wk = params["wk"].astype(cdt)
    wv = params["wv"].astype(cdt)
    wr = params["wr"].astype(cdt)

    full = lambda i: (0, 0)
    grid_spec = pltpu.PrefetchScalarGridSpec(
        num_scalar_prefetch=0,
        grid=grid,
        in_specs=[
            pl.BlockSpec((blk_rows, C), lambda i: (i, 0)),      # x tokens
            pl.BlockSpec((C, K), full),                         # wq
            pl.BlockSpec((1, K), full),                         # bq
            pl.BlockSpec((C, K), full),                         # wk
            pl.BlockSpec((1, K), full),                         # bk
            pl.BlockSpec((C, C), full),                         # wv
            pl.BlockSpec((1, C), full),                         # bv
            pl.BlockSpec((C, C), full),                         # wr
            pl.BlockSpec((1, C), full),                         # br
            pl.BlockSpec(memory_space=pltpu.MemorySpace.SMEM),  # gamma scalar
        ],
        out_specs=[
            pl.BlockSpec((blk_rows, K), lambda i: (i, 0)),      # seg slab
            pl.BlockSpec((blk_rows, C), lambda i: (i, 0)),      # feat slab
        ],
    )

    kernel = functools.partial(_sem_window_attn_kernel, n_tok=N)
    seg_flat, feat_flat = pl.pallas_call(
        kernel,
        out_shape=(
            jax.ShapeDtypeStruct((rows, K), jnp.float32),
            jax.ShapeDtypeStruct((rows, C), jnp.float32),
        ),
        grid_spec=grid_spec,
        compiler_params=pltpu.CompilerParams(
            dimension_semantics=("parallel",)),
    )(
        xw,
        wq, params["bq"],
        wk, params["bk"],
        wv, params["bv"],
        wr, params["br"],
        params["gamma"],
    )

    # Window reverse: (nW*N, D) -> (B, H, W, D).
    def reverse(y):
        D = y.shape[-1]
        y = y.reshape(B, H // ws, W // ws, ws, ws, D)
        return y.transpose(0, 1, 3, 2, 4, 5).reshape(B, H, W, D)

    return reverse(seg_flat), reverse(feat_flat)


# ------------------------- pure-JAX reference ------------------------------ #

def sem_window_attention_ref(x, params, ws, compute_dtype=jnp.bfloat16):
    """Reference with the same bf16-operand / f32-accumulate precision choices
    as the kernel (the module's math; dropout identity, gamma-gated residual)."""
    B, H, W, C = x.shape
    N = ws * ws
    cdt = compute_dtype
    f32 = jnp.float32

    xw = x.reshape(B, H // ws, ws, W // ws, ws, C)
    xw = xw.transpose(0, 1, 3, 2, 4, 5).reshape(-1, N, C)
    xb = xw.astype(cdt)

    q = jnp.einsum("bnc,ck->bnk", xb, params["wq"].astype(cdt),
                   preferred_element_type=f32) + params["bq"][0]
    k = jnp.einsum("bnc,ck->bnk", xb, params["wk"].astype(cdt),
                   preferred_element_type=f32) + params["bk"][0]
    v = jnp.einsum("bnc,cd->bnd", xb, params["wv"].astype(cdt),
                   preferred_element_type=f32) + params["bv"][0]

    s = jnp.einsum("bnk,bmk->bnm", q.astype(cdt), k.astype(cdt),
                   preferred_element_type=f32)
    p = jax.nn.softmax(s, axis=-1)
    o = jnp.einsum("bnm,bmc->bnc", p.astype(cdt), v.astype(cdt),
                   preferred_element_type=f32)
    r = jnp.einsum("bnc,cd->bnd", o.astype(cdt), params["wr"].astype(cdt),
                   preferred_element_type=f32) + params["br"][0]
    f = params["gamma"][0] * r + xw

    def reverse(y):
        D = y.shape[-1]
        y = y.reshape(B, H // ws, W // ws, ws, ws, D)
        return y.transpose(0, 1, 3, 2, 4, 5).reshape(B, H, W, D)

    return reverse(q), reverse(f)


# --------------------------------- main ------------------------------------ #

if __name__ == "__main__":
    B, H, W, C = 2, 16, 16, 32
    window_size = 4
    n_cls = 8

    key = jax.random.PRNGKey(0)
    kx, k1, k2, k3, k4 = jax.random.split(key, 5)
    x = jax.random.normal(kx, (B, H, W, C), jnp.float32)

    # PyTorch's _init_weight() zeros mlp_res.weight and gamma; here we use
    # nonzero random values so the numerical check actually exercises the
    # attention / residual-projection path (forward semantics are unchanged).
    std = (2.0 / C) ** 0.5  # kaiming_normal_ (fan_in, gain sqrt(2))
    params = {
        "wq": std * jax.random.normal(k1, (C, n_cls), jnp.float32),
        "bq": jnp.zeros((1, n_cls), jnp.float32),
        "wk": std * jax.random.normal(k2, (C, n_cls), jnp.float32),
        "bk": jnp.zeros((1, n_cls), jnp.float32),
        "wv": std * jax.random.normal(k3, (C, C), jnp.float32),
        "bv": jnp.zeros((1, C), jnp.float32),
        "wr": std * jax.random.normal(k4, (C, C), jnp.float32),
        "br": jnp.zeros((1, C), jnp.float32),
        "gamma": jnp.full((1,), 0.5, jnp.float32),
    }

    fn = jax.jit(functools.partial(sem_window_attention, window_size=window_size))
    seg_map, feat_map = fn(x, params)
    jax.block_until_ready((seg_map, feat_map))

    seg_ref, feat_ref = sem_window_attention_ref(x, params, window_size)
    assert seg_map.shape == (B, H, W, n_cls)
    assert feat_map.shape == (B, H, W, C)
    assert jnp.allclose(seg_map, seg_ref, atol=2e-2, rtol=2e-2), \
        float(jnp.max(jnp.abs(seg_map - seg_ref)))
    assert jnp.allclose(feat_map, feat_ref, atol=2e-2, rtol=2e-2), \
        float(jnp.max(jnp.abs(feat_map - feat_ref)))

    print("KERNEL_OK")
</pallas_src>

<mosaic_0001>
module attributes {stable_mosaic.version = 11 : i64} {
  func.func @_sem_window_attn_kernel(%arg0: i32, %arg1: memref<256x32xf32, #tpu.memory_space<vmem>>, %arg2: memref<32x8xbf16, #tpu.memory_space<vmem>>, %arg3: memref<1x8xf32, #tpu.memory_space<vmem>>, %arg4: memref<32x8xbf16, #tpu.memory_space<vmem>>, %arg5: memref<1x8xf32, #tpu.memory_space<vmem>>, %arg6: memref<32x32xbf16, #tpu.memory_space<vmem>>, %arg7: memref<1x32xf32, #tpu.memory_space<vmem>>, %arg8: memref<32x32xbf16, #tpu.memory_space<vmem>>, %arg9: memref<1x32xf32, #tpu.memory_space<vmem>>, %arg10: memref<1xf32, #tpu.memory_space<smem>>, %arg11: memref<256x8xf32, #tpu.memory_space<vmem>>, %arg12: memref<256x32xf32, #tpu.memory_space<vmem>>) attributes {dimension_semantics = [#tpu.dimension_semantics<parallel>], iteration_bounds = array<i64: 2>, scalar_prefetch = 0 : i64, scratch_operands = 0 : i64, tpu.core_type = #tpu.core_type<tc>, window_params = [{transform_indices = @transform_0, window_bounds = array<i64: 256, 32>}, {pipeline_mode = #tpu.pipeline_mode<synchronous>, transform_indices = @transform_1, window_bounds = array<i64: 32, 8>}, {pipeline_mode = #tpu.pipeline_mode<synchronous>, transform_indices = @transform_2, window_bounds = array<i64: 1, 8>}, {pipeline_mode = #tpu.pipeline_mode<synchronous>, transform_indices = @transform_3, window_bounds = array<i64: 32, 8>}, {pipeline_mode = #tpu.pipeline_mode<synchronous>, transform_indices = @transform_4, window_bounds = array<i64: 1, 8>}, {pipeline_mode = #tpu.pipeline_mode<synchronous>, transform_indices = @transform_5, window_bounds = array<i64: 32, 32>}, {pipeline_mode = #tpu.pipeline_mode<synchronous>, transform_indices = @transform_6, window_bounds = array<i64: 1, 32>}, {pipeline_mode = #tpu.pipeline_mode<synchronous>, transform_indices = @transform_7, window_bounds = array<i64: 32, 32>}, {pipeline_mode = #tpu.pipeline_mode<synchronous>, transform_indices = @transform_8, window_bounds = array<i64: 1, 32>}, {transform_indices = @transform_9, window_bounds = array<i64: 1>}, {transform_indices = @transform_10, window_bounds = array<i64: 256, 8>}, {transform_indices = @transform_11, window_bounds = array<i64: 256, 32>}]} {
    %c0 = arith.constant 0 : index
    %c0_0 = arith.constant 0 : index
    %0 = vector.load %arg1[%c0, %c0_0] : memref<256x32xf32, #tpu.memory_space<vmem>>, vector<256x32xf32>
    %1 = arith.truncf %0 : vector<256x32xf32> to vector<256x32xbf16>
    %c0_1 = arith.constant 0 : index
    %c0_2 = arith.constant 0 : index
    %2 = vector.load %arg2[%c0_1, %c0_2] : memref<32x8xbf16, #tpu.memory_space<vmem>>, vector<32x8xbf16>
    %cst = arith.constant dense<0.000000e+00> : vector<256x8xf32>
    %3 = tpu.matmul %1, %2, %cst {dimension_numbers = #tpu.dot_dimension_numbers<[1], [0], [0], [1], [0, 0, 1, 1], [], []>} : vector<256x32xbf16>, vector<32x8xbf16>, vector<256x8xf32> -> vector<256x8xf32>
    %c0_3 = arith.constant 0 : index
    %c0_4 = arith.constant 0 : index
    %4 = vector.load %arg3[%c0_3, %c0_4] : memref<1x8xf32, #tpu.memory_space<vmem>>, vector<1x8xf32>
    %5 = vector.broadcast %4 : vector<1x8xf32> to vector<256x8xf32>
    %6 = arith.addf %3, %5 : vector<256x8xf32>
    %c0_5 = arith.constant 0 : index
    %c0_6 = arith.constant 0 : index
    %7 = vector.load %arg4[%c0_5, %c0_6] : memref<32x8xbf16, #tpu.memory_space<vmem>>, vector<32x8xbf16>
    %cst_7 = arith.constant dense<0.000000e+00> : vector<256x8xf32>
    %8 = tpu.matmul %1, %7, %cst_7 {dimension_numbers = #tpu.dot_dimension_numbers<[1], [0], [0], [1], [0, 0, 1, 1], [], []>} : vector<256x32xbf16>, vector<32x8xbf16>, vector<256x8xf32> -> vector<256x8xf32>
    %c0_8 = arith.constant 0 : index
    %c0_9 = arith.constant 0 : index
    %9 = vector.load %arg5[%c0_8, %c0_9] : memref<1x8xf32, #tpu.memory_space<vmem>>, vector<1x8xf32>
    %10 = vector.broadcast %9 : vector<1x8xf32> to vector<256x8xf32>
    %11 = arith.addf %8, %10 : vector<256x8xf32>
    %c0_10 = arith.constant 0 : index
    %c0_11 = arith.constant 0 : index
    %12 = vector.load %arg6[%c0_10, %c0_11] : memref<32x32xbf16, #tpu.memory_space<vmem>>, vector<32x32xbf16>
    %cst_12 = arith.constant dense<0.000000e+00> : vector<256x32xf32>
    %13 = tpu.matmul %1, %12, %cst_12 {dimension_numbers = #tpu.dot_dimension_numbers<[1], [0], [0], [1], [0, 0, 1, 1], [], []>} : vector<256x32xbf16>, vector<32x32xbf16>, vector<256x32xf32> -> vector<256x32xf32>
    %c0_13 = arith.constant 0 : index
    %c0_14 = arith.constant 0 : index
    %14 = vector.load %arg7[%c0_13, %c0_14] : memref<1x32xf32, #tpu.memory_space<vmem>>, vector<1x32xf32>
    %15 = vector.broadcast %14 : vector<1x32xf32> to vector<256x32xf32>
    %16 = arith.addf %13, %15 : vector<256x32xf32>
    %c0_15 = arith.constant 0 : index
    %c0_16 = arith.constant 0 : index
    %17 = vector.load %arg11[%c0_15, %c0_16] : memref<256x8xf32, #tpu.memory_space<vmem>>, vector<256x8xf32>
    tpu.vector_store %arg11[%c0_15, %c0_16], %6 {strides = array<i32>} : memref<256x8xf32, #tpu.memory_space<vmem>>, vector<256x8xf32>,
    %18 = arith.truncf %6 : vector<256x8xf32> to vector<256x8xbf16>
    %19 = vector.shape_cast %18 : vector<256x8xbf16> to vector<16x16x8xbf16>
    %20 = arith.truncf %11 : vector<256x8xf32> to vector<256x8xbf16>
    %21 = vector.shape_cast %20 : vector<256x8xbf16> to vector<16x16x8xbf16>
    %22 = arith.truncf %16 : vector<256x32xf32> to vector<256x32xbf16>
    %23 = vector.shape_cast %22 : vector<256x32xbf16> to vector<16x16x32xbf16>
    "tpu.trace_start"() <{level = 10 : i32, message = "bnk,bmk->bnm"}> : () -> ()
    %cst_17 = arith.constant dense<0.000000e+00> : vector<16x16x16xf32>
    %24 = tpu.matmul %19, %21, %cst_17 {dimension_numbers = #tpu.dot_dimension_numbers<[2], [2], [1], [1], [0, 0, 0, 1, 1, 1], [0], [0]>} : vector<16x16x8xbf16>, vector<16x16x8xbf16>, vector<16x16x16xf32> -> vector<16x16x16xf32>
    "tpu.trace_stop"() : () -> ()
    %cst_18 = arith.constant dense<0xFF800000> : vector<16x16xf32>
    %25 = vector.multi_reduction <maximumf>, %24, %cst_18 [2] : vector<16x16x16xf32> to vector<16x16xf32>
    %26 = vector.shape_cast %25 : vector<16x16xf32> to vector<16x16x1xf32>
    %27 = vector.broadcast %26 : vector<16x16x1xf32> to vector<16x16x16xf32>
    %28 = arith.subf %24, %27 : vector<16x16x16xf32>
    %29 = math.exp %28 : vector<16x16x16xf32>
    %cst_19 = arith.constant dense<0.000000e+00> : vector<16x16xf32>
    %30 = vector.multi_reduction <add>, %29, %cst_19 [2] : vector<16x16x16xf32> to vector<16x16xf32>
    %31 = vector.shape_cast %30 : vector<16x16xf32> to vector<16x16x1xf32>
    %32 = tpu.reciprocal %31 {approx = true} : vector<16x16x1xf32> -> vector<16x16x1xf32>
    %33 = vector.broadcast %32 : vector<16x16x1xf32> to vector<16x16x16xf32>
    %34 = arith.mulf %29, %33 : vector<16x16x16xf32>
    %35 = arith.truncf %34 : vector<16x16x16xf32> to vector<16x16x16xbf16>
    "tpu.trace_start"() <{level = 10 : i32, message = "bnm,bmc->bnc"}> : () -> ()
    %cst_20 = arith.constant dense<0.000000e+00> : vector<16x16x32xf32>
    %36 = tpu.matmul %35, %23, %cst_20 {dimension_numbers = #tpu.dot_dimension_numbers<[2], [1], [1], [2], [0, 0, 0, 1, 1, 2], [0], [0]>} : vector<16x16x16xbf16>, vector<16x16x32xbf16>, vector<16x16x32xf32> -> vector<16x16x32xf32>
    "tpu.trace_stop"() : () -> ()
    %37 = vector.shape_cast %36 : vector<16x16x32xf32> to vector<256x32xf32>
    %38 = arith.truncf %37 : vector<256x32xf32> to vector<256x32xbf16>
    %c0_21 = arith.constant 0 : index
    %c0_22 = arith.constant 0 : index
    %39 = vector.load %arg8[%c0_21, %c0_22] : memref<32x32xbf16, #tpu.memory_space<vmem>>, vector<32x32xbf16>
    %cst_23 = arith.constant dense<0.000000e+00> : vector<256x32xf32>
    %40 = tpu.matmul %38, %39, %cst_23 {dimension_numbers = #tpu.dot_dimension_numbers<[1], [0], [0], [1], [0, 0, 1, 1], [], []>} : vector<256x32xbf16>, vector<32x32xbf16>, vector<256x32xf32> -> vector<256x32xf32>
    %c0_24 = arith.constant 0 : index
    %c0_25 = arith.constant 0 : index
    %41 = vector.load %arg9[%c0_24, %c0_25] : memref<1x32xf32, #tpu.memory_space<vmem>>, vector<1x32xf32>
    %42 = vector.broadcast %41 : vector<1x32xf32> to vector<256x32xf32>
    %43 = arith.addf %40, %42 : vector<256x32xf32>
    %c0_26 = arith.constant 0 : index
    %44 = memref.load %arg10[%c0_26] : memref<1xf32, #tpu.memory_space<smem>>
    %45 = vector.broadcast %44 : f32 to vector<256x32xf32>
    %46 = arith.mulf %45, %43 : vector<256x32xf32>
    %47 = arith.addf %46, %0 : vector<256x32xf32>
    %c0_27 = arith.constant 0 : index
    %c0_28 = arith.constant 0 : index
    %48 = vector.load %arg12[%c0_27, %c0_28] : memref<256x32xf32, #tpu.memory_space<vmem>>, vector<256x32xf32>
    tpu.vector_store %arg12[%c0_27, %c0_28], %47 {strides = array<i32>} : memref<256x32xf32, #tpu.memory_space<vmem>>, vector<256x32xf32>,
    return
  }
  func.func @transform_0(%arg0: i32) -> (i32, i32) {
    %c0_i32 = arith.constant 0 : i32
    %c0_i32_0 = arith.constant 0 : i32
    return %arg0, %c0_i32 : i32, i32
  }
  func.func @transform_1(%arg0: i32) -> (i32, i32) {
    %c0_i32 = arith.constant 0 : i32
    %c0_i32_0 = arith.constant 0 : i32
    %c0_i32_1 = arith.constant 0 : i32
    return %c0_i32, %c0_i32_0 : i32, i32
  }
  func.func @transform_2(%arg0: i32) -> (i32, i32) {
    %c0_i32 = arith.constant 0 : i32
    %c0_i32_0 = arith.constant 0 : i32
    %c0_i32_1 = arith.constant 0 : i32
    return %c0_i32, %c0_i32_0 : i32, i32
  }
  func.func @transform_3(%arg0: i32) -> (i32, i32) {
    %c0_i32 = arith.constant 0 : i32
    %c0_i32_0 = arith.constant 0 : i32
    %c0_i32_1 = arith.constant 0 : i32
    return %c0_i32, %c0_i32_0 : i32, i32
  }
  func.func @transform_4(%arg0: i32) -> (i32, i32) {
    %c0_i32 = arith.constant 0 : i32
    %c0_i32_0 = arith.constant 0 : i32
    %c0_i32_1 = arith.constant 0 : i32
    return %c0_i32, %c0_i32_0 : i32, i32
  }
  func.func @transform_5(%arg0: i32) -> (i32, i32) {
    %c0_i32 = arith.constant 0 : i32
    %c0_i32_0 = arith.constant 0 : i32
    %c0_i32_1 = arith.constant 0 : i32
    return %c0_i32, %c0_i32_0 : i32, i32
  }
  func.func @transform_6(%arg0: i32) -> (i32, i32) {
    %c0_i32 = arith.constant 0 : i32
    %c0_i32_0 = arith.constant 0 : i32
    %c0_i32_1 = arith.constant 0 : i32
    return %c0_i32, %c0_i32_0 : i32, i32
  }
  func.func @transform_7(%arg0: i32) -> (i32, i32) {
    %c0_i32 = arith.constant 0 : i32
    %c0_i32_0 = arith.constant 0 : i32
    %c0_i32_1 = arith.constant 0 : i32
    return %c0_i32, %c0_i32_0 : i32, i32
  }
  func.func @transform_8(%arg0: i32) -> (i32, i32) {
    %c0_i32 = arith.constant 0 : i32
    %c0_i32_0 = arith.constant 0 : i32
    %c0_i32_1 = arith.constant 0 : i32
    return %c0_i32, %c0_i32_0 : i32, i32
  }
  func.func @transform_9(%arg0: i32) -> i32 {
    %c0_i32 = arith.constant 0 : i32
    %c0_i32_0 = arith.constant 0 : i32
    return %c0_i32 : i32
  }
  func.func @transform_10(%arg0: i32) -> (i32, i32) {
    %c0_i32 = arith.constant 0 : i32
    %c0_i32_0 = arith.constant 0 : i32
    return %arg0, %c0_i32 : i32, i32
  }
  func.func @transform_11(%arg0: i32) -> (i32, i32) {
    %c0_i32 = arith.constant 0 : i32
    %c0_i32_0 = arith.constant 0 : i32
    return %arg0, %c0_i32 : i32, i32
  }
}

</mosaic_0001>

<bundles_post_ra>
// kernel: sem_window_attention.1
= control target key start
LH: loop header
LB: loop body
LE: loop exit
PB: predicated region body
PF: predicated region fallthrough
CT: control target
= control target key end

     0   :  { %s4245_s19 = smov 0   ;;  %s5554_s0 = inlined_call_operand.vmem [shape: f32[512,32], index: 0, kind: input, shape index: {}]   ;;  %s5555_s1 = inlined_call_operand.vmem [shape: bf16[32,8], index: 1, kind: input, shape index: {}]   ;;  %s5556_s2 = inlined_call_operand.vmem [shape: f32[1,8], index: 2, kind: input, shape index: {}]   ;;  %s5557_s3 = inlined_call_operand.vmem [shape: bf16[32,8], index: 3, kind: input, shape index: {}]   ;;  %s5558_s4 = inlined_call_operand.vmem [shape: f32[1,8], index: 4, kind: input, shape index: {}]   ;;  %s5559_s5 = inlined_call_operand.vmem [shape: bf16[32,32], index: 5, kind: input, shape index: {}]   ;;  %s5560_s6 = inlined_call_operand.vmem [shape: f32[1,32], index: 6, kind: input, shape index: {}]   ;;  %s5561_s7 = inlined_call_operand.vmem [shape: bf16[32,32], index: 7, kind: input, shape index: {}]   ;;  %s5562_s8 = inlined_call_operand.vmem [shape: f32[1,32], index: 8, kind: input, shape index: {}]   ;;  %s5563_s9 = inlined_call_operand.<no memory space> [shape: f32[1], index: 9, kind: input, shape index: {}]   ;;  %s5564_s10 = inlined_call_operand.vmem [shape: f32[512,8], index: 10, kind: output, shape index: {0}]   ;;  %s5565_s11 = inlined_call_operand.vmem [shape: f32[512,32], index: 11, kind: output, shape index: {1}]  }
   0x1   :  { %17 = sst [smem:[#allocation2]] %s5563_s9 }
   0x2 LB: > { %s3397_s20 = sadd.s32 4294967295, %s4178_s19   ;;  %p3401_p0 = scmp.ge.s32.totalorder %s4178_s19, 1  ;;  %s4178_s19 = sphi %s4245_s19, %s23_s19  }
   0x3   : > { %p342_p1 = scmp.lt.s32.totalorder %s4178_s19, 3 }
   0x5   : > { %p343_p2 = pnand %p3401_p0, %p342_p1 }
   0x7   : > { %346 = sbr.rel (%p343_p2) target bundleno = 1270 (0x4f6), region = 60 }
   0xc   : > { %v4004_v0 = vld [vmem:[%s5555_s1 + $0x8] sm:$0xff]   ;;  %s3402_s9 = sshll.u32 %s3397_s20, 5  ;;  %v4005_v1 = vld [vmem:[%s5555_s1] sm:$0xff]   ;;  %vm477_vm0 = vcmask 261120   ;;  %v5566_v54 = vmov 0.0   ;;  %vm4181_vm1 = vmmov 0  }
   0xd   : > { %p388_p3 = scmp.lt.s32.totalorder %s3402_s9, 63  ;;  %3990 = vmatprep.subr.bf16.mxu1 %v4004_v0  ;;  %3654 = vmatprep.subr.bf16.mxu0 %v4004_v0  ;;  %v4006_v2 = vld [vmem:[%s5557_s3 + $0x8] sm:$0xff]   ;;  %v4007_v12 = vld [vmem:[%s5557_s3] sm:$0xff]   ;;  %vm1055_vm2 = vcmask 64512   ;;  %vm1888_vm3 = vcmask 130048   ;;  %s3209_s14 = sld [smem:[#allocation2]] }
   0xe   : > { %3992 = vmatpush3.bf16.msra.mxu1 %v4004_v0  ;;  %3655 = vmatpush3.bf16.msra.mxu0 %v4004_v0  ;;  %v4008_v52 = vld [vmem:[%s5559_s5 + $0x8] sm:$0xff]   ;;  %v4009_v53 = vld [vmem:[%s5559_s5] sm:$0xff]  }
   0xf   : > { %s5611_s9 = smov (!%p388_p3, %s3402_s9), 63  ;;  %3991 = vmatprep.subr.bf16.mxu1 %v4005_v1  ;;  %3656 = vmatprep.subr.bf16.mxu0 %v4005_v1  ;;  %v4403_v55 = vld [vmem:[%s5556_s2] ss:$0 sm:$0xff] }
  0x10   : > { %s4262_s27 = sshll.u32 %s5611_s9, 3 }
  0x11   : > { %s4268_s30 = scalar_lea.vmem %s5554_s0, %s4262_s27  ;;  %s4409_s9 = scalar_lea.vmem %s5564_s10, %s4262_s27 }
  0x12   : > { %3993 = vmatpush3.bf16.msra.mxu1 %v4005_v1  ;;  %v422_v3 = vld [vmem:[%s4268_s30 + $0x80] sm:$0xff]  ;;  %v423_v4 = vld [vmem:[%s4268_s30 + $0x88] sm:$0xff]  ;;  %v424_v5 = vld [vmem:[%s4268_s30 + $0x90] sm:$0xff]  ;;  %3657 = vmatpush3.bf16.msra.mxu0 %v4005_v1  ;;  %s5392_s20 = scalar_lea.vmem %s5565_s11, %s4262_s27 }
  0x13   : > { %v4273_v6 = vpack.c.bf16 %v423_v4, %v422_v3  ;;  %v425_v7 = vld [vmem:[%s4268_s30 + $0x98] sm:$0xff]  ;;  %v426_v8 = vld [vmem:[%s4268_s30 + $0xa0] sm:$0xff]  ;;  %v427_v9 = vld [vmem:[%s4268_s30 + $0xa8] sm:$0xff]  ;;  %3690 = vmatprep.subr.bf16.mxu1 %v4006_v2  ;;  %3726 = vmatprep.subr.bf16.mxu0 %v4008_v52 }
  0x14   : > { %v4278_v10 = vpack.c.bf16 %v425_v7, %v424_v5  ;;  %v4280_v11 = vpack.c.bf16 %v427_v9, %v426_v8  ;;  %v428_v13 = vld [vmem:[%s4268_s30 + $0xb0] sm:$0xff]  ;;  %v429_v14 = vld [vmem:[%s4268_s30 + $0xb8] sm:$0xff]  ;;  %v430_v15 = vld [vmem:[%s4268_s30 + $0xc0] sm:$0xff] }
  0x15   : > { %3674 = vmatprep.mubr.msk.bf16.mxu1 %vm477_vm0, %v4273_v6  ;;  %v431_v16 = vld [vmem:[%s4268_s30 + $0xc8] sm:$0xff]  ;;  %v406_v17 = vld [vmem:[%s4268_s30] sm:$0xff]  ;;  %v408_v20 = vld [vmem:[%s4268_s30 + $0x10] sm:$0xff]  ;;  %v4303_v25 = vpack.c.bf16 %v429_v14, %v428_v13 }
  0x16   : > { %3675 = vmatmul.mubr.msk.bf16.vlgmr.msra.gmra.mxu1 %vm477_vm0, %v4278_v10  ;;  %v407_v18 = vld [vmem:[%s4268_s30 + $0x8] sm:$0xff]  ;;  %v409_v21 = vld [vmem:[%s4268_s30 + $0x18] sm:$0xff]  ;;  %v410_v22 = vld [vmem:[%s4268_s30 + $0x20] sm:$0xff]  ;;  %v4306_v27 = vpack.c.bf16 %v431_v16, %v430_v15 }
  0x17   : > { %3678 = vmatprep.mubr.msk.bf16.mxu1 %vm477_vm0, %v4280_v11  ;;  %3691 = vmatpush3.bf16.msra.mxu1 %v4006_v2  ;;  %v438_v19 = vpack.c.bf16 %v407_v18, %v406_v17  ;;  %v4300_v23 = vpack.c.bf16 %v409_v21, %v408_v20  ;;  %v411_v24 = vld [vmem:[%s4268_s30 + $0x28] sm:$0xff]  ;;  %v432_v28 = vld [vmem:[%s4268_s30 + $0xd0] sm:$0xff]  ;;  %v413_v30 = vld [vmem:[%s4268_s30 + $0x38] sm:$0xff] }
  0x18   : > { %3692 = vmatprep.subr.bf16.mxu1 %v4007_v12  ;;  %v440_v26 = vpack.c.bf16 %v411_v24, %v410_v22  ;;  %v412_v29 = vld [vmem:[%s4268_s30 + $0x30] sm:$0xff]  ;;  %v433_v31 = vld [vmem:[%s4268_s30 + $0xd8] sm:$0xff]  ;;  %v414_v32 = vld [vmem:[%s4268_s30 + $0x40] sm:$0xff] }
  0x19   : > { %3658 = vmatprep.mubr.msk.bf16.mxu0 %vm477_vm0, %v438_v19  ;;  %v415_v33 = vld [vmem:[%s4268_s30 + $0x48] sm:$0xff]  ;;  %v434_v34 = vld [vmem:[%s4268_s30 + $0xe0] sm:$0xff]  ;;  %v441_v36 = vpack.c.bf16 %v413_v30, %v412_v29  ;;  %v4323_v37 = vpack.c.bf16 %v433_v31, %v432_v28  ;;  %v436_v40 = vld [vmem:[%s4268_s30 + $0xf0] sm:$0xff] }
  0x1a   : > { %3659 = vmatmul.mubr.msk.bf16.vlgmr.msra.gmra.mxu0 %vm477_vm0, %v4300_v23  ;;  %v435_v35 = vld [vmem:[%s4268_s30 + $0xe8] sm:$0xff]  ;;  %v442_v38 = vpack.c.bf16 %v415_v33, %v414_v32  ;;  %v416_v41 = vld [vmem:[%s4268_s30 + $0x50] sm:$0xff]  ;;  %v417_v42 = vld [vmem:[%s4268_s30 + $0x58] sm:$0xff] }
  0x1b   : > { %3693 = vmatpush3.bf16.msra.mxu1 %v4007_v12  ;;  %3662 = vmatprep.mubr.msk.bf16.mxu0 %vm477_vm0, %v440_v26  ;;  %v452_v39 = vpack.c.bf16 %v435_v35, %v434_v34  ;;  %v437_v43 = vld [vmem:[%s4268_s30 + $0xf8] sm:$0xff]  ;;  %v418_v44 = vld [vmem:[%s4268_s30 + $0x60] sm:$0xff]  ;;  %v419_v45 = vld [vmem:[%s4268_s30 + $0x68] sm:$0xff]  ;;  %v443_v46 = vpack.c.bf16 %v417_v42, %v416_v41 }
  0x1c   : > { %v453_v47 = vpack.c.bf16 %v437_v43, %v436_v40  ;;  %v444_v48 = vpack.c.bf16 %v419_v45, %v418_v44  ;;  %v420_v49 = vld [vmem:[%s4268_s30 + $0x70] sm:$0xff]  ;;  %v421_v50 = vld [vmem:[%s4268_s30 + $0x78] sm:$0xff]  ;;  %3727 = vmatpush3.bf16.msra.mxu0 %v4008_v52  ;;  %3762 = vmatprep.subr.bf16.mxu1 %v5566_v54 }
  0x1d   : > { %v445_v51 = vpack.c.bf16 %v421_v50, %v420_v49  ;;  %3728 = vmatprep.subr.bf16.mxu0 %v4009_v53 }
  0x1e   : > { %3679 = vmatmul.mubr.msk.bf16.gmra.mxu1 %vm477_vm0, %v4303_v25 }
  0x1f   : > { %3682 = vmatprep.mubr.msk.bf16.mxu1 %vm477_vm0, %v4306_v27 }
  0x20   : > { %3729 = vmatpush3.bf16.msra.mxu0 %v4009_v53 }
  0x21   : > { %3810 = vmatprep.subr.bf16.mxu0 %v5566_v54 }
  0x22   : > { %3663 = vmatmul.mubr.msk.bf16.gmra.mxu0 %vm477_vm0, %v441_v36 }
  0x23   : > { %3666 = vmatprep.mubr.msk.bf16.mxu0 %vm477_vm0, %v442_v38 }
  0x26   : > { %3683 = vmatmul.mubr.msk.bf16.gmra.mxu1 %vm477_vm0, %v4323_v37 }
  0x27   : > { %3686 = vmatprep.mubr.msk.bf16.mxu1 %vm477_vm0, %v452_v39 }
  0x2a   : > { %3667 = vmatmul.mubr.msk.bf16.gmra.mxu0 %vm477_vm0, %v443_v46 }
  0x2b   : > { %3670 = vmatprep.mubr.msk.bf16.mxu0 %vm477_vm0, %v444_v48 }
  0x2e   : > { %3687 = vmatmul.mubr.msk.bf16.gmra.mxu1 %vm477_vm0, %v453_v47 }
  0x2f   : > { %3694 = vmatprep.mubr.msk.bf16.mxu1 %vm477_vm0, %v438_v19 }
  0x32   : > { %3671 = vmatmul.mubr.msk.bf16.gmra.mxu0 %vm477_vm0, %v445_v51 }
  0x33   : > { %3730 = vmatprep.mubr.msk.bf16.mxu0 %vm477_vm0, %v438_v19 }
  0x36   : > { %3695 = vmatmul.mubr.msk.bf16.vlgmr.msra.gmra.mxu1 %vm477_vm0, %v4300_v23 }
  0x37   : > { %3698 = vmatprep.mubr.msk.bf16.mxu1 %vm477_vm0, %v440_v26 }
  0x3a   : > { %3731 = vmatmul.mubr.msk.bf16.vlgmr.msra.gmra.mxu0 %vm477_vm0, %v4300_v23 }
  0x3b   : > { %3734 = vmatprep.mubr.msk.bf16.mxu0 %vm477_vm0, %v440_v26 }
  0x3e   : > { %3699 = vmatmul.mubr.msk.bf16.gmra.mxu1 %vm477_vm0, %v441_v36 }
  0x3f   : > { %3702 = vmatprep.mubr.msk.bf16.mxu1 %vm477_vm0, %v442_v38 }
  0x42   : > { %3735 = vmatmul.mubr.msk.bf16.gmra.mxu0 %vm477_vm0, %v441_v36 }
  0x43   : > { %3738 = vmatprep.mubr.msk.bf16.mxu0 %vm477_vm0, %v442_v38 }
  0x46   : > { %3703 = vmatmul.mubr.msk.bf16.gmra.mxu1 %vm477_vm0, %v443_v46 }
  0x47   : > { %3706 = vmatprep.mubr.msk.bf16.mxu1 %vm477_vm0, %v444_v48 }
  0x4a   : > { %3739 = vmatmul.mubr.msk.bf16.gmra.mxu0 %vm477_vm0, %v443_v46 }
  0x4b   : > { %3742 = vmatprep.mubr.msk.bf16.mxu0 %vm477_vm0, %v444_v48 }
  0x4e   : > { %3707 = vmatmul.mubr.msk.bf16.gmra.mxu1 %vm477_vm0, %v445_v51 }
  0x4f   : > { %3710 = vmatprep.mubr.msk.bf16.mxu1 %vm477_vm0, %v4273_v6 }
  0x52   : > { %3743 = vmatmul.mubr.msk.bf16.gmra.mxu0 %vm477_vm0, %v445_v51 }
  0x53   : > { %3746 = vmatprep.mubr.msk.bf16.mxu0 %vm477_vm0, %v4273_v6 }
  0x56   : > { %3711 = vmatmul.mubr.msk.bf16.gmra.mxu1 %vm477_vm0, %v4278_v10 }
  0x57   : > { %3714 = vmatprep.mubr.msk.bf16.mxu1 %vm477_vm0, %v4280_v11 }
  0x5a   : > { %3747 = vmatmul.mubr.msk.bf16.gmra.mxu0 %vm477_vm0, %v4278_v10 }
  0x5b   : > { %3750 = vmatprep.mubr.msk.bf16.mxu0 %vm477_vm0, %v4280_v11 }
  0x5e   : > { %3715 = vmatmul.mubr.msk.bf16.gmra.mxu1 %vm477_vm0, %v4303_v25 }
  0x5f   : > { %3718 = vmatprep.mubr.msk.bf16.mxu1 %vm477_vm0, %v4306_v27 }
  0x62   : > { %3751 = vmatmul.mubr.msk.bf16.gmra.mxu0 %vm477_vm0, %v4303_v25 }
  0x63   : > { %3754 = vmatprep.mubr.msk.bf16.mxu0 %vm477_vm0, %v4306_v27 }
  0x66   : > { %3719 = vmatmul.mubr.msk.bf16.gmra.mxu1 %vm477_vm0, %v4323_v37 }
  0x67   : > { %3722 = vmatprep.mubr.msk.bf16.mxu1 %vm477_vm0, %v452_v39 }
  0x6a   : > { %3755 = vmatmul.mubr.msk.bf16.gmra.mxu0 %vm477_vm0, %v4323_v37 }
  0x6b   : > { %3758 = vmatprep.mubr.msk.bf16.mxu0 %vm477_vm0, %v452_v39 }
  0x6e   : > { %3723 = vmatmul.mubr.msk.bf16.gmra.mxu1 %vm477_vm0, %v453_v47 }
  0x6f   : > { %3764 = vmatprep.mubr.msk.bf16.mxu1 %vm4181_vm1, %v5566_v54 }
  0x72   : > { %3759 = vmatmul.mubr.msk.bf16.gmra.mxu0 %vm477_vm0, %v453_v47 }
  0x73   : > { %3812 = vmatprep.mubr.msk.bf16.mxu0 %vm4181_vm1, %v5566_v54 }
  0xd6   : > { %v3676_v56 = vpop.f32.mrf.mxu1 }
  0xd7   : > { %v4412_v57 = vadd.f32 %v3676_v56, %v4403_v55 }
  0xd8   : > { %v624_v58 = vpop.f32.mrf.mxu1 }
  0xd9   : > { %1074 = vst.msk [vmem:[%s4409_s9 + $0x90] sm:$0xff] %vm1055_vm2, %v4412_v57  ;;  %v4418_v59 = vadd.f32 %v4403_v55, %v624_v58 }
  0xda   : > { %v3677_v60 = vpop.f32.mrf.mxu1  ;;  %v3660_v62 = vpop.f32.mrf.mxu0 }
  0xdb   : > { %1072 = vst.msk [vmem:[%s4409_s9 + $0x80] sm:$0xff] %vm1055_vm2, %v4418_v59  ;;  %v4424_v61 = vadd.f32 %v3677_v60, %v4403_v55  ;;  %v4427_v0 = vadd.f32 %v3660_v62, %v4403_v55 }
  0xdc   : > { %v627_v63 = vpop.f32.mrf.mxu1  ;;  %v560_v3 = vpop.f32.mrf.mxu0 }
  0xdd   : > { %1075 = vst.msk [vmem:[%s4409_s9 + $0x98] sm:$0xff] %vm1055_vm2, %v4424_v61  ;;  %v1097_v1 = vpack.c.bf16 %v4424_v61, %v4412_v57  ;;  %v4435_v2 = vadd.f32 %v4403_v55, %v627_v63  ;;  %1058 = vst.msk [vmem:[%s4409_s9 + $0x10] sm:$0xff] %vm1055_vm2, %v4427_v0  ;;  %v4441_v5 = vadd.f32 %v4403_v55, %v560_v3 }
  0xde   : > { %v3680_v4 = vpop.f32.mrf.mxu1  ;;  %v3661_v8 = vpop.f32.mrf.mxu0 }
  0xdf   : > { %1073 = vst.msk [vmem:[%s4409_s9 + $0x88] sm:$0xff] %vm1055_vm2, %v4435_v2  ;;  %v1096_v6 = vpack.c.bf16 %v4435_v2, %v4418_v59  ;;  %v4449_v7 = vadd.f32 %v3680_v4, %v4403_v55  ;;  %1056 = vst.msk [vmem:[%s4409_s9] sm:$0xff] %vm1055_vm2, %v4441_v5  ;;  %v4455_v10 = vadd.f32 %v3661_v8, %v4403_v55 }
  0xe0   : > { %v640_v9 = vpop.f32.mrf.mxu1  ;;  %v563_v12 = vpop.f32.mrf.mxu0 }
  0xe1   : > { %1078 = vst.msk [vmem:[%s4409_s9 + $0xb0] sm:$0xff] %vm1055_vm2, %v4449_v7  ;;  %v4461_v11 = vadd.f32 %v4403_v55, %v640_v9  ;;  %1059 = vst.msk [vmem:[%s4409_s9 + $0x18] sm:$0xff] %vm1055_vm2, %v4455_v10  ;;  %v4467_v14 = vadd.f32 %v4403_v55, %v563_v12 }
  0xe2   : > { %v3681_v13 = vpop.f32.mrf.mxu1  ;;  %v3664_v16 = vpop.f32.mrf.mxu0 }
  0xe3   : > { %1076 = vst.msk [vmem:[%s4409_s9 + $0xa0] sm:$0xff] %vm1055_vm2, %v4461_v11  ;;  %v4473_v15 = vadd.f32 %v3681_v13, %v4403_v55  ;;  %1057 = vst.msk [vmem:[%s4409_s9 + $0x8] sm:$0xff] %vm1055_vm2, %v4467_v14  ;;  %v4479_v18 = vadd.f32 %v3664_v16, %v4403_v55 }
  0xe4   : > { %v643_v17 = vpop.f32.mrf.mxu1  ;;  %v576_v21 = vpop.f32.mrf.mxu0 }
  0xe5   : > { %1079 = vst.msk [vmem:[%s4409_s9 + $0xb8] sm:$0xff] %vm1055_vm2, %v4473_v15  ;;  %v1099_v19 = vpack.c.bf16 %v4473_v15, %v4449_v7  ;;  %v4487_v20 = vadd.f32 %v4403_v55, %v643_v17  ;;  %1062 = vst.msk [vmem:[%s4409_s9 + $0x30] sm:$0xff] %vm1055_vm2, %v4479_v18  ;;  %v4493_v23 = vadd.f32 %v4403_v55, %v576_v21 }
  0xe6   : > { %v3684_v22 = vpop.f32.mrf.mxu1  ;;  %v3665_v26 = vpop.f32.mrf.mxu0 }
  0xe7   : > { %1077 = vst.msk [vmem:[%s4409_s9 + $0xa8] sm:$0xff] %vm1055_vm2, %v4487_v20  ;;  %v1098_v24 = vpack.c.bf16 %v4487_v20, %v4461_v11  ;;  %v4501_v25 = vadd.f32 %v3684_v22, %v4403_v55  ;;  %1060 = vst.msk [vmem:[%s4409_s9 + $0x20] sm:$0xff] %vm1055_vm2, %v4493_v23  ;;  %v4507_v28 = vadd.f32 %v3665_v26, %v4403_v55  ;;  %v4621_v22 = vld [vmem:[%s5558_s4] ss:$0 sm:$0xff] }
  0xe8   : > { %v656_v27 = vpop.f32.mrf.mxu1  ;;  %v579_v30 = vpop.f32.mrf.mxu0 }
  0xe9   : > { %1082 = vst.msk [vmem:[%s4409_s9 + $0xd0] sm:$0xff] %vm1055_vm2, %v4501_v25  ;;  %v4513_v29 = vadd.f32 %v4403_v55, %v656_v27  ;;  %1063 = vst.msk [vmem:[%s4409_s9 + $0x38] sm:$0xff] %vm1055_vm2, %v4507_v28  ;;  %v4519_v32 = vadd.f32 %v4403_v55, %v579_v30 }
  0xea   : > { %v3685_v31 = vpop.f32.mrf.mxu1  ;;  %v3668_v34 = vpop.f32.mrf.mxu0 }
  0xeb   : > { %1080 = vst.msk [vmem:[%s4409_s9 + $0xc0] sm:$0xff] %vm1055_vm2, %v4513_v29  ;;  %v4525_v33 = vadd.f32 %v3685_v31, %v4403_v55  ;;  %1061 = vst.msk [vmem:[%s4409_s9 + $0x28] sm:$0xff] %vm1055_vm2, %v4519_v32  ;;  %v4531_v36 = vadd.f32 %v3668_v34, %v4403_v55 }
  0xec   : > { %v659_v35 = vpop.f32.mrf.mxu1  ;;  %v592_v39 = vpop.f32.mrf.mxu0 }
  0xed   : > { %1083 = vst.msk [vmem:[%s4409_s9 + $0xd8] sm:$0xff] %vm1055_vm2, %v4525_v33  ;;  %v1101_v37 = vpack.c.bf16 %v4525_v33, %v4501_v25  ;;  %v4539_v38 = vadd.f32 %v4403_v55, %v659_v35  ;;  %1066 = vst.msk [vmem:[%s4409_s9 + $0x50] sm:$0xff] %vm1055_vm2, %v4531_v36  ;;  %v4545_v41 = vadd.f32 %v4403_v55, %v592_v39 }
  0xee   : > { %v3688_v40 = vpop.f32.mrf.mxu1  ;;  %v3669_v44 = vpop.f32.mrf.mxu0 }
  0xef   : > { %1081 = vst.msk [vmem:[%s4409_s9 + $0xc8] sm:$0xff] %vm1055_vm2, %v4539_v38  ;;  %v1100_v42 = vpack.c.bf16 %v4539_v38, %v4513_v29  ;;  %v4553_v43 = vadd.f32 %v3688_v40, %v4403_v55  ;;  %1064 = vst.msk [vmem:[%s4409_s9 + $0x40] sm:$0xff] %vm1055_vm2, %v4545_v41  ;;  %v4559_v46 = vadd.f32 %v3669_v44, %v4403_v55 }
  0xf0   : > { %v672_v45 = vpop.f32.mrf.mxu1  ;;  %v595_v48 = vpop.f32.mrf.mxu0 }
  0xf1   : > { %1086 = vst.msk [vmem:[%s4409_s9 + $0xf0] sm:$0xff] %vm1055_vm2, %v4553_v43  ;;  %v4565_v47 = vadd.f32 %v4403_v55, %v672_v45  ;;  %1067 = vst.msk [vmem:[%s4409_s9 + $0x58] sm:$0xff] %vm1055_vm2, %v4559_v46  ;;  %v4571_v50 = vadd.f32 %v4403_v55, %v595_v48 }
  0xf2   : > { %v3689_v49 = vpop.f32.mrf.mxu1  ;;  %v3672_v52 = vpop.f32.mrf.mxu0 }
  0xf3   : > { %1084 = vst.msk [vmem:[%s4409_s9 + $0xe0] sm:$0xff] %vm1055_vm2, %v4565_v47  ;;  %v4577_v51 = vadd.f32 %v3689_v49, %v4403_v55  ;;  %1065 = vst.msk [vmem:[%s4409_s9 + $0x48] sm:$0xff] %vm1055_vm2, %v4571_v50  ;;  %v4583_v56 = vadd.f32 %v3672_v52, %v4403_v55  ;;  %v1088_v52 = vpack.c.bf16 %v4467_v14, %v4441_v5 }
  0xf4   : > { %v675_v53 = vpop.f32.mrf.mxu1  ;;  %v608_v62 = vpop.f32.mrf.mxu0  ;;  %v1089_v5 = vpack.c.bf16 %v4455_v10, %v4427_v0  ;;  %v1090_v10 = vpack.c.bf16 %v4519_v32, %v4493_v23 }
  0xf5   : > { %1087 = vst.msk [vmem:[%s4409_s9 + $0xf8] sm:$0xff] %vm1055_vm2, %v4577_v51  ;;  %v1103_v58 = vpack.c.bf16 %v4577_v51, %v4553_v43  ;;  %v4591_v60 = vadd.f32 %v4403_v55, %v675_v53  ;;  %1070 = vst.msk [vmem:[%s4409_s9 + $0x70] sm:$0xff] %vm1055_vm2, %v4583_v56  ;;  %v4597_v3 = vadd.f32 %v4403_v55, %v608_v62 }
  0xf6   : > { %v3696_v63 = vpop.f32.mrf.mxu1  ;;  %v3673_v8 = vpop.f32.mrf.mxu0 }
  0xf7   : > { %1085 = vst.msk [vmem:[%s4409_s9 + $0xe8] sm:$0xff] %vm1055_vm2, %v4591_v60  ;;  %v1102_v4 = vpack.c.bf16 %v4591_v60, %v4565_v47  ;;  %1068 = vst.msk [vmem:[%s4409_s9 + $0x60] sm:$0xff] %vm1055_vm2, %v4597_v3  ;;  %v4608_v12 = vadd.f32 %v3673_v8, %v4403_v55  ;;  %v753_v44 = vadd.f32 %v3696_v63, %v4621_v22 }
  0xf8   : > { %v744_v9 = vpop.f32.mrf.mxu1  ;;  %v611_v13 = vpop.f32.mrf.mxu0 }
  0xf9   : > { %1071 = vst.msk [vmem:[%s4409_s9 + $0x78] sm:$0xff] %vm1055_vm2, %v4608_v12  ;;  %v1095_v17 = vpack.c.bf16 %v4608_v12, %v4583_v56  ;;  %v4616_v21 = vadd.f32 %v4403_v55, %v611_v13  ;;  %v745_v27 = vadd.f32 %v4621_v22, %v744_v9 }
  0xfa   : > { %v3697_v16 = vpop.f32.mrf.mxu1 }
  0xfb   : > { %1069 = vst.msk [vmem:[%s4409_s9 + $0x68] sm:$0xff] %vm1055_vm2, %v4616_v21  ;;  %v756_v39 = vadd.f32 %v3697_v16, %v4621_v22 }
  0xfc   : > { %v747_v26 = vpop.f32.mrf.mxu1 }
  0xfd   : > { %v748_v30 = vadd.f32 %v4621_v22, %v747_v26  ;;  %v1105_v48 = vpack.c.bf16 %v756_v39, %v753_v44 }
  0xfe   : > { %v3700_v31 = vpop.f32.mrf.mxu1 }
  0xff   : > { %v1104_v34 = vpack.c.bf16 %v748_v30, %v745_v27  ;;  %v1187_v9 = vsel %vm1055_vm2, %v1105_v48, 0  ;;  %v769_v27 = vadd.f32 %v3700_v31, %v4621_v22 }
 0x100   : > { %v760_v35 = vpop.f32.mrf.mxu1 }
 0x101   : > { %v1140_v55 = vsel %vm1055_vm2, %v1104_v34, 0  ;;  %v761_v62 = vadd.f32 %v4621_v22, %v760_v35 }
 0x102   : > { %v3701_v40 = vpop.f32.mrf.mxu1  ;;  %3763 = vmatpush3.bf16.xpose.msra.mxu1 %v1140_v55 }
 0x103   : > { %3768 = vmatprep.subr.bf16.mxu1 %v5566_v54  ;;  %v772_v30 = vadd.f32 %v3701_v40, %v4621_v22 }
 0x104   : > { %v763_v45 = vpop.f32.mrf.mxu1 }
 0x105   : > { %v764_v8 = vadd.f32 %v4621_v22, %v763_v45  ;;  %v1107_v55 = vpack.c.bf16 %v772_v30, %v769_v27 }
 0x106   : > { %v3704_v49 = vpop.f32.mrf.mxu1 }
 0x107   : > { %v1106_v16 = vpack.c.bf16 %v764_v8, %v761_v62  ;;  %v1281_v45 = vsel %vm1055_vm2, %v1107_v55, 0  ;;  %v1091_v8 = vpack.c.bf16 %v4507_v28, %v4479_v18 }
 0x108   : > { %v776_v53 = vpop.f32.mrf.mxu1 }
 0x109   : > { %3765 = vmatmul.mubr.msk.bf16.vlgmr.msra.gmra.mxu1 %vm1055_vm2, %v1088_v52  ;;  %v1234_v34 = vsel %vm1055_vm2, %v1106_v16, 0  ;;  %v777_v40 = vadd.f32 %v4621_v22, %v776_v53  ;;  %v785_v16 = vadd.f32 %v3704_v49, %v4621_v22 }
 0x10a   : > { %v3705_v13 = vpop.f32.mrf.mxu1  ;;  %3769 = vmatpush3.bf16.xpose.msra.mxu1 %v1187_v9  ;;  %3770 = vmatprep.mubr.msk.bf16.mxu1 %vm4181_vm1, %v5566_v54 }
 0x10b   : > { %3774 = vmatprep.subr.bf16.mxu1 %v5566_v54 }
 0x10c   : > { %v779_v63 = vpop.f32.mrf.mxu1 }
 0x10d   : > { %v780_v44 = vadd.f32 %v4621_v22, %v779_v63 }
 0x10e   : > { %v4641_v26 = vpop.f32.mrf.mxu1 }
 0x10f   : > { %v1108_v32 = vpack.c.bf16 %v780_v44, %v777_v40 }
 0x110   : > { %v792_v14 = vpop.f32.mrf.mxu1 }
 0x111   : > { %3771 = vmatmul.mubr.msk.bf16.vlgmr.msra.gmra.mxu1 %vm1055_vm2, %v1089_v5  ;;  %v788_v5 = vadd.f32 %v3705_v13, %v4621_v22  ;;  %v1328_v27 = vsel %vm1055_vm2, %v1108_v32, 0  ;;  %v793_v44 = vadd.f32 %v4621_v22, %v792_v14  ;;  %v4699_v32 = vpop.f32.mrf.mxu0 }
 0x112   : > { %v4649_v35 = vpop.f32.mrf.mxu1  ;;  %3775 = vmatpush3.bf16.xpose.msra.mxu1 %v1234_v34  ;;  %3776 = vmatprep.mubr.msk.bf16.mxu1 %vm4181_vm1, %v5566_v54 }
 0x113   : > { %3780 = vmatprep.subr.bf16.mxu1 %v5566_v54  ;;  %v1109_v28 = vpack.c.bf16 %v788_v5, %v785_v16  ;;  %v928_v59 = vpop.f32.mrf.mxu0  ;;  %v801_v5 = vadd.f32 %v4641_v26, %v4621_v22 }
 0x114   : > { %v795_v39 = vpop.f32.mrf.mxu1 }
 0x116   : > { %v4654_v0 = vpop.f32.mrf.mxu1 }
 0x118   : > { %v808_v31 = vpop.f32.mrf.mxu1 }
 0x119   : > { %3777 = vmatmul.mubr.msk.bf16.vlgmr.msra.gmra.mxu1 %vm1055_vm2, %v1090_v10  ;;  %v809_v52 = vadd.f32 %v4621_v22, %v808_v31  ;;  %v1092_v10 = vpack.c.bf16 %v4571_v50, %v4545_v41 }
 0x11a   : > { %v4662_v48 = vpop.f32.mrf.mxu1  ;;  %3781 = vmatpush3.bf16.xpose.msra.mxu1 %v1281_v45  ;;  %3782 = vmatprep.mubr.msk.bf16.mxu1 %vm4181_vm1, %v5566_v54  ;;  %v796_v45 = vadd.f32 %v4621_v22, %v795_v39  ;;  %v4711_v39 = vpop.f32.mrf.mxu0 }
 0x11b   : > { %3786 = vmatprep.subr.bf16.mxu1 %v5566_v54 }
 0x11c   : > { %v811_v23 = vpop.f32.mrf.mxu1 }
 0x11d   : > { %v812_v53 = vadd.f32 %v4621_v22, %v811_v23 }
 0x11e   : > { %v4669_v62 = vpop.f32.mrf.mxu1 }
 0x11f   : > { %v1112_v9 = vpack.c.bf16 %v812_v53, %v809_v52  ;;  %v1375_v52 = vsel %vm1055_vm2, %v1109_v28, 0 }
 0x120   : > { %v824_v63 = vpop.f32.mrf.mxu1 }
 0x121   : > { %3783 = vmatmul.mubr.msk.bf16.vlgmr.msra.gmra.mxu1 %vm1055_vm2, %v1091_v8  ;;  %v1516_v30 = vsel %vm1055_vm2, %v1112_v9, 0  ;;  %v825_v55 = vadd.f32 %v4621_v22, %v824_v63  ;;  %v1093_v8 = vpack.c.bf16 %v4559_v46, %v4531_v36  ;;  %v931_v63 = vpop.f32.mrf.mxu0  ;;  %v4731_v46 = vld [vmem:[%s5560_s6] ss:$0 sm:$0xff] }
 0x122   : > { %v4678_v34 = vpop.f32.mrf.mxu1  ;;  %3787 = vmatpush3.bf16.xpose.msra.mxu1 %v1328_v27  ;;  %3811 = vmatpush3.bf16.xpose.msra.mxu0 %v1516_v30  ;;  %v804_v27 = vadd.f32 %v4649_v35, %v4621_v22  ;;  %v929_v29 = vadd.f32 %v4731_v46, %v928_v59  ;;  %v932_v38 = vadd.f32 %v4731_v46, %v931_v63 }
 0x123   : > { %3788 = vmatprep.mubr.msk.bf16.mxu1 %vm4181_vm1, %v5566_v54  ;;  %3792 = vmatprep.subr.bf16.mxu1 %v5566_v54  ;;  %v3736_v26 = vpop.f32.mrf.mxu0 }
 0x124   : > { %v827_v18 = vpop.f32.mrf.mxu1  ;;  %3822 = vmatprep.subr.bf16.mxu0 %v5566_v54  ;;  %v4736_v35 = vadd.f32 %v3736_v26, %v4731_v46  ;;  %v1111_v28 = vpack.c.bf16 %v804_v27, %v801_v5  ;;  %v1120_v5 = vpack.c.bf16 %v932_v38, %v929_v29 }
 0x125   : > { %v828_v49 = vadd.f32 %v4621_v22, %v827_v18  ;;  %v944_v20 = vpop.f32.mrf.mxu0 }
 0x126   : > { %v4686_v13 = vpop.f32.mrf.mxu1  ;;  %v4746_v18 = vadd.f32 %v4731_v46, %v944_v20 }
 0x127   : > { %v1114_v31 = vpack.c.bf16 %v828_v49, %v825_v55 }
 0x128   : > { %v840_v40 = vpop.f32.mrf.mxu1 }
 0x129   : > { %3789 = vmatmul.mubr.msk.bf16.vlgmr.msra.gmra.mxu1 %vm1055_vm2, %v1092_v10  ;;  %3813 = vmatmul.mubr.msk.bf16.vlgmr.msra.gmra.mxu0 %vm1055_vm2, %v1096_v6  ;;  %v1610_v23 = vsel %vm1055_vm2, %v1114_v31, 0  ;;  %v841_v50 = vadd.f32 %v4621_v22, %v840_v40  ;;  %v1110_v6 = vpack.c.bf16 %v796_v45, %v793_v44  ;;  %v3737_v10 = vpop.f32.mrf.mxu0  ;;  %v1094_v40 = vpack.c.bf16 %v4616_v21, %v4597_v3 }
 0x12a   : > { %v4701_v41 = vpop.f32.mrf.mxu1  ;;  %3793 = vmatpush3.bf16.xpose.msra.mxu1 %v1375_v52  ;;  %3823 = vmatpush3.bf16.xpose.msra.mxu0 %v1610_v23  ;;  %v4750_v31 = vadd.f32 %v3737_v10, %v4731_v46  ;;  %v1469_v3 = vsel %vm1055_vm2, %v1111_v28, 0  ;;  %v849_v28 = vadd.f32 %v4686_v13, %v4621_v22 }
 0x12b   : > { %3794 = vmatprep.mubr.msk.bf16.mxu1 %vm4181_vm1, %v5566_v54  ;;  %3824 = vmatprep.mubr.msk.bf16.mxu0 %vm4181_vm1, %v5566_v54  ;;  %v1422_v30 = vsel %vm1055_vm2, %v1110_v6, 0  ;;  %v947_v45 = vpop.f32.mrf.mxu0 }
 0x12c   : > { %v843_v2 = vpop.f32.mrf.mxu1  ;;  %3798 = vmatprep.subr.bf16.mxu1 %v5566_v54  ;;  %3834 = vmatprep.subr.bf16.mxu0 %v5566_v54  ;;  %v4757_v23 = vadd.f32 %v4731_v46, %v947_v45 }
 0x12d   : > { %v844_v14 = vadd.f32 %v4621_v22, %v843_v2  ;;  %v820_v2 = vadd.f32 %v4662_v48, %v4621_v22  ;;  %v3740_v6 = vpop.f32.mrf.mxu0 }
 0x12e   : > { %v4713_v53 = vpop.f32.mrf.mxu1 }
 0x12f   : > { %v1116_v9 = vpack.c.bf16 %v844_v14, %v841_v50  ;;  %v817_v50 = vadd.f32 %v4654_v0, %v4621_v22  ;;  %v4773_v14 = vadd.f32 %v3740_v6, %v4731_v46 }
 0x130   : > { %v856_v16 = vpop.f32.mrf.mxu1 }
 0x131   : > { %3795 = vmatmul.mubr.msk.bf16.vlgmr.msra.gmra.mxu1 %vm1055_vm2, %v1093_v8  ;;  %3825 = vmatmul.mubr.msk.bf16.vlgmr.msra.gmra.mxu0 %vm1055_vm2, %v1098_v24  ;;  %v1704_v36 = vsel %vm1055_vm2, %v1116_v9, 0  ;;  %v857_v11 = vadd.f32 %v4621_v22, %v856_v16  ;;  %v1113_v8 = vpack.c.bf16 %v820_v2, %v817_v50 }
 0x132   : > { %v4733_v55 = vpop.f32.mrf.mxu1  ;;  %3799 = vmatpush3.bf16.xpose.msra.mxu1 %v1422_v30  ;;  %3835 = vmatpush3.bf16.xpose.msra.mxu0 %v1704_v36  ;;  %v833_v30 = vadd.f32 %v4669_v62, %v4621_v22  ;;  %v836_v36 = vadd.f32 %v4678_v34, %v4621_v22 }
 0x133   : > { %3800 = vmatprep.mubr.msk.bf16.mxu1 %vm4181_vm1, %v5566_v54  ;;  %3836 = vmatprep.mubr.msk.bf16.mxu0 %vm4181_vm1, %v5566_v54  ;;  %v1563_v26 = vsel %vm1055_vm2, %v1113_v8, 0  ;;  %v868_v6 = vadd.f32 %v4733_v55, %v4621_v22 }
 0x134   : > { %v859_v24 = vpop.f32.mrf.mxu1  ;;  %3804 = vmatprep.subr.bf16.mxu1 %v5566_v54  ;;  %3846 = vmatprep.subr.bf16.mxu0 %v5566_v54  ;;  %v1115_v60 = vpack.c.bf16 %v836_v36, %v833_v30  ;;  %v937_v30 = vadd.f32 %v4699_v32, %v4731_v46 }
 0x135   : > { %v860_v49 = vadd.f32 %v4621_v22, %v859_v24 }
 0x136   : > { %v1657_v10 = vsel %vm1055_vm2, %v1115_v60, 0 }
 0x137   : > { %v1118_v44 = vpack.c.bf16 %v860_v49, %v857_v11  ;;  %v852_v49 = vadd.f32 %v4701_v41, %v4621_v22 }
 0x139   : > { %3801 = vmatmul.mubr.msk.bf16.vlgmr.msra.gmra.mxu1 %vm1055_vm2, %v1094_v40  ;;  %3837 = vmatmul.mubr.msk.bf16.vlgmr.msra.gmra.mxu0 %vm1055_vm2, %v1100_v42  ;;  %v1798_v21 = vsel %vm1055_vm2, %v1118_v44, 0  ;;  %v960_v42 = vpop.f32.mrf.mxu0  ;;  %v1117_v61 = vpack.c.bf16 %v852_v49, %v849_v28 }
 0x13a   : > { %3805 = vmatpush3.bf16.xpose.msra.mxu1 %v1469_v3  ;;  %3847 = vmatpush3.bf16.xpose.msra.mxu0 %v1798_v21  ;;  %v4783_v48 = vadd.f32 %v4731_v46, %v960_v42  ;;  %v865_v21 = vadd.f32 %v4713_v53, %v4621_v22 }
 0x13b   : > { %3806 = vmatprep.mubr.msk.bf16.mxu1 %vm4181_vm1, %v5566_v54  ;;  %3848 = vmatprep.mubr.msk.bf16.mxu0 %vm4181_vm1, %v5566_v54  ;;  %v3741_v9 = vpop.f32.mrf.mxu0  ;;  %v1751_v29 = vsel %vm1055_vm2, %v1117_v61, 0 }
 0x13c   : > { %3816 = vmatprep.subr.bf16.mxu1 %v5566_v54  ;;  %3858 = vmatprep.subr.bf16.mxu0 %v5566_v54  ;;  %v4787_v16 = vadd.f32 %v3741_v9, %v4731_v46  ;;  %v1119_v15 = vpack.c.bf16 %v868_v6, %v865_v21 }
 0x13d   : > { %v963_v27 = vpop.f32.mrf.mxu0 }
 0x13e   : > { %v4792_v63 = vadd.f32 %v4731_v46, %v963_v27  ;;  %v1845_v27 = vsel %vm1055_vm2, %v1119_v15, 0 }
 0x13f   : > { %v3744_v11 = vpop.f32.mrf.mxu0 }
 0x140   : > { %v4812_v34 = vadd.f32 %v3744_v11, %v4731_v46 }
 0x141   : > { %3807 = vmatmul.mubr.msk.bf16.vlgmr.msra.gmra.mxu1 %vm1055_vm2, %v1095_v17  ;;  %3849 = vmatmul.mubr.msk.bf16.vlgmr.msra.gmra.mxu0 %vm1055_vm2, %v1102_v4  ;;  %v976_v56 = vpop.f32.mrf.mxu0 }
 0x142   : > { %3817 = vmatpush3.bf16.xpose.msra.mxu1 %v1563_v26  ;;  %3818 = vmatprep.mubr.msk.bf16.mxu1 %vm4181_vm1, %v5566_v54  ;;  %v4816_v47 = vadd.f32 %v4731_v46, %v976_v56  ;;  %v940_v26 = vadd.f32 %v4711_v39, %v4731_v46 }
 0x143   : > { %3828 = vmatprep.subr.bf16.mxu1 %v5566_v54  ;;  %3859 = vmatpush3.bf16.msra.mxu0 %v1120_v5  ;;  %v3745_v4 = vpop.f32.mrf.mxu0 }
 0x144   : > { %3860 = vmatprep.mubr.msk.bf16.mxu0 %vm4181_vm1, %v5566_v54  ;;  %3870 = vmatprep.subr.bf16.mxu0 %v5566_v54  ;;  %v4822_v12 = vadd.f32 %v3745_v4, %v4731_v46  ;;  %v1121_v56 = vpack.c.bf16 %v940_v26, %v937_v30 }
 0x145   : > { %v979_v17 = vpop.f32.mrf.mxu0 }
 0x146   : > { %v4827_v24 = vadd.f32 %v4731_v46, %v979_v17 }
 0x147   : > { %v3748_v40 = vpop.f32.mrf.mxu0 }
 0x148   : > { %v4843_v13 = vadd.f32 %v3748_v40, %v4731_v46 }
 0x149   : > { %3819 = vmatmul.mubr.msk.bf16.vlgmr.msra.gmra.mxu1 %vm1055_vm2, %v1097_v1  ;;  %v992_v41 = vpop.f32.mrf.mxu0 }
 0x14a   : > { %3829 = vmatpush3.bf16.xpose.msra.mxu1 %v1657_v10  ;;  %3830 = vmatprep.mubr.msk.bf16.mxu1 %vm4181_vm1, %v5566_v54  ;;  %v4847_v57 = vadd.f32 %v4731_v46, %v992_v41 }
 0x14b   : > { %3840 = vmatprep.subr.bf16.mxu1 %v5566_v54  ;;  %v3749_v1 = vpop.f32.mrf.mxu0 }
 0x14c   : > { %v4850_v45 = vadd.f32 %v3749_v1, %v4731_v46 }
 0x14d   : > { %v995_v50 = vpop.f32.mrf.mxu0 }
 0x14e   : > { %v4855_v3 = vadd.f32 %v4731_v46, %v995_v50 }
 0x14f   : > { %v3752_v38 = vpop.f32.mrf.mxu0 }
 0x150   : > { %v4871_v53 = vadd.f32 %v3752_v38, %v4731_v46 }
 0x151   : > { %3831 = vmatmul.mubr.msk.bf16.vlgmr.msra.gmra.mxu1 %vm1055_vm2, %v1099_v19  ;;  %v1008_v22 = vpop.f32.mrf.mxu0 }
 0x152   : > { %3841 = vmatpush3.bf16.xpose.msra.mxu1 %v1751_v29  ;;  %3842 = vmatprep.mubr.msk.bf16.mxu1 %vm4181_vm1, %v5566_v54  ;;  %5577 = vst [vmem:[#allocation3_spill] sm:$0xff] %v4871_v53  ;;  %v4875_v7 = vadd.f32 %v4731_v46, %v1008_v22 }
 0x153   : > { %3852 = vmatprep.subr.bf16.mxu1 %v5566_v54  ;;  %v3753_v19 = vpop.f32.mrf.mxu0 }
 0x154   : > { %v4878_v55 = vadd.f32 %v3753_v19, %v4731_v46 }
 0x155   : > { %v1011_v8 = vpop.f32.mrf.mxu0 }
 0x156   : > { %v4883_v5 = vadd.f32 %v4731_v46, %v1011_v8 }
 0x157   : > { %v3756_v36 = vpop.f32.mrf.mxu0 }
 0x158   : > { %v4899_v25 = vadd.f32 %v3756_v36, %v4731_v46 }
 0x159   : > { %3843 = vmatmul.mubr.msk.bf16.vlgmr.msra.gmra.mxu1 %vm1055_vm2, %v1101_v37  ;;  %v1024_v33 = vpop.f32.mrf.mxu0 }
 0x15a   : > { %3853 = vmatpush3.bf16.xpose.msra.mxu1 %v1845_v27  ;;  %3854 = vmatprep.mubr.msk.bf16.mxu1 %vm4181_vm1, %v5566_v54  ;;  %5578 = vst [vmem:[#allocation4_spill] sm:$0xff] %v4899_v25  ;;  %v4903_v37 = vadd.f32 %v4731_v46, %v1024_v33 }
 0x15b   : > { %3864 = vmatprep.subr.bf16.mxu1 %v5566_v54  ;;  %v3757_v32 = vpop.f32.mrf.mxu0 }
 0x15c   : > { %5579 = vst [vmem:[#allocation5_spill] sm:$0xff] %v4903_v37  ;;  %v4906_v60 = vadd.f32 %v3757_v32, %v4731_v46 }
 0x15d   : > { %v1027_v4 = vpop.f32.mrf.mxu0 }
 0x15e   : > { %5580 = vst [vmem:[#allocation6_spill] sm:$0xff] %v4906_v60  ;;  %v4911_v17 = vadd.f32 %v4731_v46, %v1027_v4 }
 0x15f   : > { %v3760_v28 = vpop.f32.mrf.mxu0 }
 0x160   : > { %5581 = vst [vmem:[#allocation7_spill] sm:$0xff] %v4911_v17  ;;  %v4920_v10 = vadd.f32 %v3760_v28, %v4731_v46 }
 0x161   : > { %3855 = vmatmul.mubr.msk.bf16.vlgmr.msra.gmra.mxu1 %vm1055_vm2, %v1103_v58  ;;  %v1040_v40 = vpop.f32.mrf.mxu0 }
 0x162   : > { %5582 = vst [vmem:[#allocation8_spill] sm:$0xff] %v4920_v10  ;;  %3865 = vmatpush3.bf16.msra.mxu1 %v1121_v56  ;;  %3866 = vmatprep.mubr.msk.bf16.mxu1 %vm4181_vm1, %v5566_v54  ;;  %v4926_v41 = vadd.f32 %v4731_v46, %v1040_v40 }
 0x163   : > { %3876 = vmatprep.subr.bf16.mxu1 %v5566_v54  ;;  %v3761_v43 = vpop.f32.mrf.mxu0 }
 0x164   : > { %5583 = vst [vmem:[#allocation9_spill] sm:$0xff] %v4926_v41  ;;  %v4929_v51 = vadd.f32 %v3761_v43, %v4731_v46 }
 0x165   : > { %v1043_v58 = vpop.f32.mrf.mxu0 }
 0x166   : > { %5584 = vst [vmem:[#allocation10_spill] sm:$0xff] %v4929_v51  ;;  %v4934_v1 = vadd.f32 %v4731_v46, %v1043_v58 }
 0x168   : > { %5585 = vst [vmem:[#allocation11_spill] sm:$0xff] %v4934_v1 }
 0x1c9   : > { %v4938_v21 = vpop.f32.mrf.mxu1 }
 0x1ca   : > { %v1889_v6 = vsel %vm1888_vm3, %v4938_v21, -inf }
 0x1cb   : > { %1890 = vmax.xlane.f32.xlu0 %v1889_v6  ;;  %v3766_v29 = vpop.f32.mrf.mxu1 }
 0x1cd   : > { %v4942_v38 = vpop.f32.mrf.mxu1 }
 0x1ce   : > { %v1892_v22 = vsel %vm1888_vm3, %v4942_v38, -inf }
 0x1cf   : > { %1893 = vmax.xlane.f32.xlu0 %v1892_v22  ;;  %v3767_v15 = vpop.f32.mrf.mxu1 }
 0x1d1   : > { %v4946_v46 = vpop.f32.mrf.mxu1 }
 0x1d2   : > { %v1895_v19 = vsel %vm1888_vm3, %v4946_v46, -inf }
 0x1d3   : > { %1896 = vmax.xlane.f32.xlu1 %v1895_v19  ;;  %v3772_v8 = vpop.f32.mrf.mxu1 }
 0x1d5   : > { %v4950_v27 = vpop.f32.mrf.mxu1 }
 0x1d6   : > { %v1898_v30 = vsel %vm1888_vm3, %v4950_v27, -inf }
 0x1d7   : > { %1899 = vmax.xlane.f32.xlu1 %v1898_v30  ;;  %v3773_v36 = vpop.f32.mrf.mxu1 }
 0x1d9   : > { %v4954_v26 = vpop.f32.mrf.mxu1 }
 0x1da   : > { %v1901_v33 = vsel %vm1888_vm3, %v4954_v26, -inf }
 0x1db   : > { %1902 = vmax.xlane.f32.xlu0 %v1901_v33  ;;  %v3778_v32 = vpop.f32.mrf.mxu1 }
 0x1dd   : > { %v4958_v56 = vpop.f32.mrf.mxu1 }
 0x1de   : > { %v1904_v4 = vsel %vm1888_vm3, %v4958_v56, -inf }
 0x1df   : > { %1905 = vmax.xlane.f32.xlu1 %v1904_v4  ;;  %v3779_v28 = vpop.f32.mrf.mxu1 }
 0x1e1   : > { %v4962_v40 = vpop.f32.mrf.mxu1 }
 0x1e2   : > { %v1907_v43 = vsel %vm1888_vm3, %v4962_v40, -inf }
 0x1e3   : > { %1908 = vmax.xlane.f32.xlu0 %v1907_v43  ;;  %v3784_v58 = vpop.f32.mrf.mxu1 }
 0x1e5   : > { %v4966_v6 = vpop.f32.mrf.mxu1 }
 0x1e6   : > { %v1910_v29 = vsel %vm1888_vm3, %v4966_v6, -inf }
 0x1e7   : > { %1911 = vmax.xlane.f32.xlu1 %v1910_v29  ;;  %v3785_v22 = vpop.f32.mrf.mxu1 }
 0x1e9   : > { %v4970_v15 = vpop.f32.mrf.mxu1  ;;  %v4972_v19 = vpop.f32.mrf.mxu0 }
 0x1ea   : > { %v1913_v8 = vsel %vm1888_vm3, %v4970_v15, -inf  ;;  %v1937_v44 = vsel %vm1888_vm3, %v4972_v19, -inf }
 0x1eb   : > { %v3814_v30 = vpop.f32.mrf.mxu0  ;;  %1914 = vmax.xlane.f32.xlu0 %v1913_v8  ;;  %v3790_v36 = vpop.f32.mrf.mxu1 }
 0x1ed   : > { %v4976_v33 = vpop.f32.mrf.mxu1  ;;  %v4978_v32 = vpop.f32.mrf.mxu0 }
 0x1ee   : > { %v1916_v4 = vsel %vm1888_vm3, %v4976_v33, -inf }
 0x1ef   : > { %v3815_v28 = vpop.f32.mrf.mxu0  ;;  %1917 = vmax.xlane.f32.xlu1 %v1916_v4  ;;  %v3791_v43 = vpop.f32.mrf.mxu1 }
 0x1f1   : > { %v4982_v58 = vpop.f32.mrf.mxu1  ;;  %v4984_v29 = vpop.f32.mrf.mxu0 }
 0x1f2   : > { %v1919_v22 = vsel %vm1888_vm3, %v4982_v58, -inf  ;;  %v1949_v52 = vsel %vm1888_vm3, %v4984_v29, -inf }
 0x1f3   : > { %v3826_v30 = vpop.f32.mrf.mxu0  ;;  %1920 = vmax.xlane.f32.xlu0 %v1919_v22  ;;  %v3796_v8 = vpop.f32.mrf.mxu1 }
 0x1f5   : > { %v4988_v36 = vpop.f32.mrf.mxu1  ;;  %v4990_v61 = vpop.f32.mrf.mxu0 }
 0x1f6   : > { %v1922_v50 = vsel %vm1888_vm3, %v4988_v36, -inf }
 0x1f7   : > { %v3827_v28 = vpop.f32.mrf.mxu0  ;;  %1923 = vmax.xlane.f32.xlu1 %v1922_v50  ;;  %v3797_v4 = vpop.f32.mrf.mxu1 }
 0x1f9   : > { %v4994_v43 = vpop.f32.mrf.mxu1  ;;  %v4996_v39 = vpop.f32.mrf.mxu0 }
 0x1fa   : > { %v1925_v49 = vsel %vm1888_vm3, %v4994_v43, -inf  ;;  %v1961_v54 = vsel %vm1888_vm3, %v4996_v39, -inf }
 0x1fb   : > { %v3838_v30 = vpop.f32.mrf.mxu0  ;;  %1926 = vmax.xlane.f32.xlu0 %v1925_v49  ;;  %v3802_v22 = vpop.f32.mrf.mxu1 }
 0x1fd   : > { %v5000_v8 = vpop.f32.mrf.mxu1  ;;  %v5002_v9 = vpop.f32.mrf.mxu0 }
 0x1fe   : > { %v1928_v11 = vsel %vm1888_vm3, %v5000_v8, -inf  ;;  %v1964_v0 = vsel %vm1888_vm3, %v5002_v9, -inf }
 0x1ff   : > { %v3839_v28 = vpop.f32.mrf.mxu0  ;;  %1929 = vmax.xlane.f32.xlu1 %v1928_v11  ;;  %v3803_v50 = vpop.f32.mrf.mxu1 }
 0x201   : > { %v5006_v4 = vpop.f32.mrf.mxu1  ;;  %v5008_v2 = vpop.f32.mrf.mxu0 }
 0x202   : > { %v1931_v42 = vsel %vm1888_vm3, %v5006_v4, -inf  ;;  %v1973_v10 = vsel %vm1888_vm3, %v5008_v2, -inf }
 0x203   : > { %v3850_v30 = vpop.f32.mrf.mxu0  ;;  %1932 = vmax.xlane.f32.xlu0 %v1931_v42  ;;  %v3808_v49 = vpop.f32.mrf.mxu1  ;;  %v1940_v42 = vsel %vm1888_vm3, %v4978_v32, -inf }
 0x205   : > { %v5012_v22 = vpop.f32.mrf.mxu1  ;;  %v5014_v20 = vpop.f32.mrf.mxu0 }
 0x206   : > { %v1934_v11 = vsel %vm1888_vm3, %v5012_v22, -inf  ;;  %v1976_v51 = vsel %vm1888_vm3, %v5014_v20, -inf }
 0x207   : > { %v3851_v28 = vpop.f32.mrf.mxu0  ;;  %1938 = vmax.xlane.f32.xlu0 %v1937_v44  ;;  %1935 = vmax.xlane.f32.xlu1 %v1934_v11  ;;  %v3809_v50 = vpop.f32.mrf.mxu1 }
 0x208   : > { %v1952_v50 = vsel %vm1888_vm3, %v4990_v61, -inf }
 0x209   : > { %v5020_v59 = vpop.f32.mrf.mxu1 }
 0x20a   : > { %v1943_v30 = vsel %vm1888_vm3, %v5020_v59, -inf }
 0x20b   : > { %1941 = vmax.xlane.f32.xlu1 %v1940_v42  ;;  %1944 = vmax.xlane.f32.xlu0 %v1943_v30  ;;  %v3820_v49 = vpop.f32.mrf.mxu1 }
 0x20d   : > { %v5026_v62 = vpop.f32.mrf.mxu1 }
 0x20e   : > { %v1946_v44 = vsel %vm1888_vm3, %v5026_v62, -inf }
 0x20f   : > { %1950 = vmax.xlane.f32.xlu0 %v1949_v52  ;;  %1947 = vmax.xlane.f32.xlu1 %v1946_v44  ;;  %v3821_v11 = vpop.f32.mrf.mxu1 }
 0x211   : > { %v5032_v28 = vpop.f32.mrf.mxu1 }
 0x212   : > { %v1955_v42 = vsel %vm1888_vm3, %v5032_v28, -inf }
 0x213   : > { %1953 = vmax.xlane.f32.xlu1 %v1952_v50  ;;  %1956 = vmax.xlane.f32.xlu0 %v1955_v42  ;;  %v3832_v30 = vpop.f32.mrf.mxu1 }
 0x215   : > { %v5038_v49 = vpop.f32.mrf.mxu1 }
 0x216   : > { %v1958_v52 = vsel %vm1888_vm3, %v5038_v49, -inf }
 0x217   : > { %1962 = vmax.xlane.f32.xlu0 %v1961_v54  ;;  %1959 = vmax.xlane.f32.xlu1 %v1958_v52  ;;  %v3833_v44 = vpop.f32.mrf.mxu1 }
 0x219   : > { %v5044_v11 = vpop.f32.mrf.mxu1 }
 0x21a   : > { %v1967_v50 = vsel %vm1888_vm3, %v5044_v11, -inf }
 0x21b   : > { %1965 = vmax.xlane.f32.xlu1 %v1964_v0  ;;  %1968 = vmax.xlane.f32.xlu0 %v1967_v50  ;;  %v3844_v42 = vpop.f32.mrf.mxu1 }
 0x21d   : > { %v5050_v30 = vpop.f32.mrf.mxu1 }
 0x21e   : > { %v1970_v54 = vsel %vm1888_vm3, %v5050_v30, -inf }
 0x21f   : > { %1974 = vmax.xlane.f32.xlu0 %v1973_v10  ;;  %1971 = vmax.xlane.f32.xlu1 %v1970_v54  ;;  %v3845_v52 = vpop.f32.mrf.mxu1 }
 0x221   : > { %v5056_v44 = vpop.f32.mrf.mxu1 }
 0x222   : > { %v1979_v0 = vsel %vm1888_vm3, %v5056_v44, -inf }
 0x223   : > { %1977 = vmax.xlane.f32.xlu1 %v1976_v51  ;;  %1980 = vmax.xlane.f32.xlu0 %v1979_v0  ;;  %v3856_v50 = vpop.f32.mrf.mxu1 }
 0x225   : > { %v5062_v42 = vpop.f32.mrf.mxu1 }
 0x226   : > { %v1982_v41 = vsel %vm1888_vm3, %v5062_v42, -inf }
 0x227   : > { %1983 = vmax.xlane.f32.xlu1 %v1982_v41  ;;  %v3857_v10 = vpop.f32.mrf.mxu1 }
 0x254   : > { %v1891_v54 = vpop.xlane.xlu0 %1890 }
 0x255   : > { %v1985_v52 = vsub.f32 %v4938_v21, %v1891_v54 }
 0x257   : > { %v2017_v1 = vmul.f32 1.442695, %v1985_v52 }
 0x258   : > { %v1894_v25 = vpop.xlane.xlu0 %1893 }
 0x259   : > { %4012 = vpow2.f32 %v2017_v1  ;;  %v1986_v60 = vsub.f32 %v4942_v38, %v1894_v25 }
 0x25b   : > { %v2019_v37 = vmul.f32 1.442695, %v1986_v60 }
 0x25c   : > { %v1897_v17 = vpop.xlane.xlu1 %1896 }
 0x25d   : > { %4014 = vpow2.f32 %v2019_v37  ;;  %v1987_v51 = vsub.f32 %v4946_v46, %v1897_v17 }
 0x25f   : > { %v2021_v0 = vmul.f32 1.442695, %v1987_v51 }
 0x260   : > { %v1900_v50 = vpop.xlane.xlu1 %1899 }
 0x261   : > { %4016 = vpow2.f32 %v2021_v0  ;;  %v1988_v53 = vsub.f32 %v4950_v27, %v1900_v50 }
 0x263   : > { %v2023_v41 = vmul.f32 1.442695, %v1988_v53 }
 0x264   : > { %v1903_v10 = vpop.xlane.xlu0 %1902 }
 0x265   : > { %4018 = vpow2.f32 %v2023_v41  ;;  %v1989_v21 = vsub.f32 %v4954_v26, %v1903_v10 }
 0x266   : > { %v5071_v54 = vpop.eup %4012 }
 0x267   : > { %v2025_v1 = vmul.f32 1.442695, %v1989_v21  ;;  %v2081_v25 = vsel %vm1888_vm3, %v5071_v54, 0.0 }
 0x268   : > { %v1906_v60 = vpop.xlane.xlu1 %1905  ;;  %2082 = vadd.xlane.f32.xlu0 %v2081_v25 }
 0x269   : > { %4020 = vpow2.f32 %v2025_v1  ;;  %v1990_v37 = vsub.f32 %v4958_v56, %v1906_v60 }
 0x26a   : > { %v5076_v17 = vpop.eup %4014 }
 0x26b   : > { %v2027_v38 = vmul.f32 1.442695, %v1990_v37  ;;  %v2084_v53 = vsel %vm1888_vm3, %v5076_v17, 0.0 }
 0x26c   : > { %v1909_v46 = vpop.xlane.xlu0 %1908  ;;  %2085 = vadd.xlane.f32.xlu1 %v2084_v53 }
 0x26d   : > { %4022 = vpow2.f32 %v2027_v38  ;;  %v1991_v27 = vsub.f32 %v4962_v40, %v1909_v46 }
 0x26e   : > { %v5081_v26 = vpop.eup %4016 }
 0x26f   : > { %v2029_v52 = vmul.f32 1.442695, %v1991_v27  ;;  %v2087_v51 = vsel %vm1888_vm3, %v5081_v26, 0.0 }
 0x270   : > { %v1912_v0 = vpop.xlane.xlu1 %1911  ;;  %2088 = vadd.xlane.f32.xlu0 %v2087_v51 }
 0x271   : > { %4024 = vpow2.f32 %v2029_v52  ;;  %v1992_v56 = vsub.f32 %v4966_v6, %v1912_v0 }
 0x272   : > { %v5086_v50 = vpop.eup %4018 }
 0x273   : > { %v2031_v41 = vmul.f32 1.442695, %v1992_v56  ;;  %v2090_v10 = vsel %vm1888_vm3, %v5086_v50, 0.0 }
 0x274   : > { %v1915_v21 = vpop.xlane.xlu0 %1914  ;;  %2091 = vadd.xlane.f32.xlu1 %v2090_v10 }
 0x275   : > { %4026 = vpow2.f32 %v2031_v41  ;;  %v1993_v40 = vsub.f32 %v4970_v15, %v1915_v21 }
 0x276   : > { %v5091_v1 = vpop.eup %4020 }
 0x277   : > { %v2033_v25 = vmul.f32 1.442695, %v1993_v40  ;;  %v2093_v60 = vsel %vm1888_vm3, %v5091_v1, 0.0 }
 0x278   : > { %v1918_v37 = vpop.xlane.xlu1 %1917  ;;  %2094 = vadd.xlane.f32.xlu0 %v2093_v60 }
 0x279   : > { %4028 = vpow2.f32 %v2033_v25  ;;  %v1994_v6 = vsub.f32 %v4976_v33, %v1918_v37 }
 0x27a   : > { %v5096_v38 = vpop.eup %4022 }
 0x27b   : > { %v2035_v53 = vmul.f32 1.442695, %v1994_v6  ;;  %v2096_v46 = vsel %vm1888_vm3, %v5096_v38, 0.0 }
 0x27c   : > { %v1921_v27 = vpop.xlane.xlu0 %1920  ;;  %2097 = vadd.xlane.f32.xlu1 %v2096_v46 }
 0x27d   : > { %4030 = vpow2.f32 %v2035_v53  ;;  %v1995_v15 = vsub.f32 %v4982_v58, %v1921_v27 }
 0x27e   : > { %v5101_v52 = vpop.eup %4024 }
 0x27f   : > { %v2037_v51 = vmul.f32 1.442695, %v1995_v15  ;;  %v2099_v0 = vsel %vm1888_vm3, %v5101_v52, 0.0 }
 0x280   : > { %v1924_v56 = vpop.xlane.xlu1 %1923  ;;  %2100 = vadd.xlane.f32.xlu0 %v2099_v0 }
 0x281   : > { %4032 = vpow2.f32 %v2037_v51  ;;  %v1996_v33 = vsub.f32 %v4988_v36, %v1924_v56 }
 0x282   : > { %v5106_v41 = vpop.eup %4026 }
 0x283   : > { %v2039_v10 = vmul.f32 1.442695, %v1996_v33  ;;  %v2102_v21 = vsel %vm1888_vm3, %v5106_v41, 0.0 }
 0x284   : > { %v1927_v40 = vpop.xlane.xlu0 %1926  ;;  %2103 = vadd.xlane.f32.xlu1 %v2102_v21 }
 0x285   : > { %4034 = vpow2.f32 %v2039_v10  ;;  %v1997_v58 = vsub.f32 %v4994_v43, %v1927_v40 }
 0x286   : > { %v5111_v25 = vpop.eup %4028 }
 0x287   : > { %v2041_v60 = vmul.f32 1.442695, %v1997_v58  ;;  %v2105_v37 = vsel %vm1888_vm3, %v5111_v25, 0.0 }
 0x288   : > { %v1930_v6 = vpop.xlane.xlu1 %1929  ;;  %2106 = vadd.xlane.f32.xlu0 %v2105_v37 }
 0x289   : > { %4036 = vpow2.f32 %v2041_v60  ;;  %v1998_v36 = vsub.f32 %v5000_v8, %v1930_v6 }
 0x28a   : > { %v5116_v53 = vpop.eup %4030 }
 0x28b   : > { %v2043_v46 = vmul.f32 1.442695, %v1998_v36  ;;  %v2108_v27 = vsel %vm1888_vm3, %v5116_v53, 0.0 }
 0x28c   : > { %v1933_v15 = vpop.xlane.xlu0 %1932  ;;  %2109 = vadd.xlane.f32.xlu1 %v2108_v27 }
 0x28d   : > { %4038 = vpow2.f32 %v2043_v46  ;;  %v1999_v43 = vsub.f32 %v5006_v4, %v1933_v15 }
 0x28e   : > { %v5121_v51 = vpop.eup %4032 }
 0x28f   : > { %v2045_v0 = vmul.f32 1.442695, %v1999_v43  ;;  %v2111_v56 = vsel %vm1888_vm3, %v5121_v51, 0.0 }
 0x290   : > { %v1939_v33 = vpop.xlane.xlu0 %1938  ;;  %v1936_v10 = vpop.xlane.xlu1 %1935  ;;  %2112 = vadd.xlane.f32.xlu0 %v2111_v56 }
 0x291   : > { %4040 = vpow2.f32 %v2045_v0  ;;  %v2001_v8 = vsub.f32 %v4972_v19, %v1939_v33  ;;  %v2000_v21 = vsub.f32 %v5012_v22, %v1936_v10 }
 0x292   : > { %v5127_v40 = vpop.eup %4034 }
 0x293   : > { %v2049_v58 = vmul.f32 1.442695, %v2001_v8  ;;  %v2047_v60 = vmul.f32 1.442695, %v2000_v21  ;;  %v2114_v4 = vsel %vm1888_vm3, %v5127_v40, 0.0 }
 0x294   : > { %v1942_v37 = vpop.xlane.xlu1 %1941  ;;  %v1945_v6 = vpop.xlane.xlu0 %1944  ;;  %2115 = vadd.xlane.f32.xlu1 %v2114_v4 }
 0x295   : > { %4042 = vpow2.f32 %v2049_v58  ;;  %v2002_v36 = vsub.f32 %v4978_v32, %v1942_v37  ;;  %v2003_v46 = vsub.f32 %v5020_v59, %v1945_v6 }
 0x296   : > { %v5133_v27 = vpop.eup %4036  ;;  %4044 = vpow2.f32 %v2047_v60 }
 0x297   : > { %v2051_v19 = vmul.f32 1.442695, %v2002_v36  ;;  %v2053_v22 = vmul.f32 1.442695, %v2003_v46  ;;  %v2117_v15 = vsel %vm1888_vm3, %v5133_v27, 0.0 }
 0x298   : > { %v1951_v43 = vpop.xlane.xlu0 %1950  ;;  %v1948_v0 = vpop.xlane.xlu1 %1947  ;;  %2118 = vadd.xlane.f32.xlu0 %v2117_v15 }
 0x299   : > { %4046 = vpow2.f32 %v2051_v19  ;;  %v2005_v56 = vsub.f32 %v4984_v29, %v1951_v43  ;;  %v2004_v33 = vsub.f32 %v5026_v62, %v1948_v0 }
 0x29a   : > { %v5139_v10 = vpop.eup %4038  ;;  %4048 = vpow2.f32 %v2053_v22 }
 0x29b   : > { %v2057_v59 = vmul.f32 1.442695, %v2005_v56  ;;  %v2055_v32 = vmul.f32 1.442695, %v2004_v33  ;;  %v2120_v8 = vsel %vm1888_vm3, %v5139_v10, 0.0 }
 0x29c   : > { %v1954_v21 = vpop.xlane.xlu1 %1953  ;;  %v1957_v58 = vpop.xlane.xlu0 %1956  ;;  %2121 = vadd.xlane.f32.xlu1 %v2120_v8 }
 0x29d   : > { %4050 = vpow2.f32 %v2057_v59  ;;  %v2006_v60 = vsub.f32 %v4990_v61, %v1954_v21  ;;  %v2007_v4 = vsub.f32 %v5032_v28, %v1957_v58 }
 0x29e   : > { %v5145_v37 = vpop.eup %4040  ;;  %4052 = vpow2.f32 %v2055_v32 }
 0x29f   : > { %v2059_v62 = vmul.f32 1.442695, %v2006_v60  ;;  %v2061_v29 = vmul.f32 1.442695, %v2007_v4  ;;  %v2123_v6 = vsel %vm1888_vm3, %v5145_v37, 0.0 }
 0x2a0   : > { %v1963_v36 = vpop.xlane.xlu0 %1962  ;;  %v1960_v46 = vpop.xlane.xlu1 %1959  ;;  %2124 = vadd.xlane.f32.xlu0 %v2123_v6 }
 0x2a1   : > { %4054 = vpow2.f32 %v2059_v62  ;;  %v2009_v19 = vsub.f32 %v4996_v39, %v1963_v36  ;;  %v2008_v22 = vsub.f32 %v5038_v49, %v1960_v46 }
 0x2a2   : > { %v5151_v15 = vpop.eup %4042  ;;  %4056 = vpow2.f32 %v2061_v29 }
 0x2a3   : > { %v5153_v61 = vpop.eup %4044  ;;  %v2065_v28 = vmul.f32 1.442695, %v2009_v19  ;;  %v2063_v43 = vmul.f32 1.442695, %v2008_v22  ;;  %v2129_v0 = vsel %vm1888_vm3, %v5151_v15, 0.0 }
 0x2a4   : > { %v1966_v56 = vpop.xlane.xlu1 %1965  ;;  %v1969_v33 = vpop.xlane.xlu0 %1968  ;;  %2130 = vadd.xlane.f32.xlu0 %v2129_v0  ;;  %v2126_v59 = vsel %vm1888_vm3, %v5153_v61, 0.0 }
 0x2a5   : > { %4058 = vpow2.f32 %v2065_v28  ;;  %v2010_v39 = vsub.f32 %v5002_v9, %v1966_v56  ;;  %v2011_v49 = vsub.f32 %v5044_v11, %v1969_v33  ;;  %2127 = vadd.xlane.f32.xlu1 %v2126_v59 }
 0x2a6   : > { %v5161_v32 = vpop.eup %4046  ;;  %4060 = vpow2.f32 %v2063_v43 }
 0x2a7   : > { %v5163_v8 = vpop.eup %4048  ;;  %v2067_v21 = vmul.f32 1.442695, %v2010_v39  ;;  %v2069_v58 = vmul.f32 1.442695, %v2011_v49  ;;  %v2132_v60 = vsel %vm1888_vm3, %v5161_v32, 0.0 }
 0x2a8   : > { %v1975_v4 = vpop.xlane.xlu0 %1974  ;;  %v1972_v62 = vpop.xlane.xlu1 %1971  ;;  %v2135_v29 = vsel %vm1888_vm3, %v5163_v8, 0.0 }
 0x2a9   : > { %4062 = vpow2.f32 %v2067_v21  ;;  %v2013_v9 = vsub.f32 %v5008_v2, %v1975_v4  ;;  %v2012_v11 = vsub.f32 %v5050_v30, %v1972_v62  ;;  %2136 = vadd.xlane.f32.xlu0 %v2135_v29  ;;  %2133 = vadd.xlane.f32.xlu1 %v2132_v60 }
 0x2aa   : > { %v5171_v6 = vpop.eup %4050  ;;  %4064 = vpow2.f32 %v2069_v58 }
 0x2ab   : > { %v5173_v36 = vpop.eup %4052  ;;  %v2073_v46 = vmul.f32 1.442695, %v2013_v9  ;;  %v2071_v19 = vmul.f32 1.442695, %v2012_v11  ;;  %v2141_v22 = vsel %vm1888_vm3, %v5171_v6, 0.0 }
 0x2ac   : > { %v1978_v28 = vpop.xlane.xlu1 %1977  ;;  %v1981_v43 = vpop.xlane.xlu0 %1980  ;;  %v2138_v0 = vsel %vm1888_vm3, %v5173_v36, 0.0 }
 0x2ad   : > { %4066 = vpow2.f32 %v2073_v46  ;;  %v2014_v2 = vsub.f32 %v5014_v20, %v1978_v28  ;;  %2142 = vadd.xlane.f32.xlu0 %v2141_v22  ;;  %v2015_v30 = vsub.f32 %v5056_v44, %v1981_v43  ;;  %2139 = vadd.xlane.f32.xlu1 %v2138_v0 }
 0x2ae   : > { %v5181_v56 = vpop.eup %4054  ;;  %4068 = vpow2.f32 %v2071_v19 }
 0x2af   : > { %v5183_v33 = vpop.eup %4056  ;;  %v2075_v59 = vmul.f32 1.442695, %v2014_v2  ;;  %v2077_v39 = vmul.f32 1.442695, %v2015_v30  ;;  %v2144_v49 = vsel %vm1888_vm3, %v5181_v56, 0.0 }
 0x2b0   : > { %v2147_v21 = vsel %vm1888_vm3, %v5183_v33, 0.0  ;;  %v1984_v58 = vpop.xlane.xlu1 %1983 }
 0x2b1   : > { %4070 = vpow2.f32 %v2075_v59  ;;  %2148 = vadd.xlane.f32.xlu0 %v2147_v21  ;;  %2145 = vadd.xlane.f32.xlu1 %v2144_v49  ;;  %v2016_v20 = vsub.f32 %v5062_v42, %v1984_v58 }
 0x2b2   : > { %v5190_v44 = vpop.eup %4058  ;;  %4072 = vpow2.f32 %v2077_v39 }
 0x2b3   : > { %v5192_v60 = vpop.eup %4060  ;;  %v2079_v4 = vmul.f32 1.442695, %v2016_v20  ;;  %v2153_v62 = vsel %vm1888_vm3, %v5190_v44, 0.0 }
 0x2b4   : > { %v2150_v29 = vsel %vm1888_vm3, %v5192_v60, 0.0 }
 0x2b5   : > { %4074 = vpow2.f32 %v2079_v4  ;;  %2154 = vadd.xlane.f32.xlu0 %v2153_v62  ;;  %2151 = vadd.xlane.f32.xlu1 %v2150_v29 }
 0x2b6   : > { %v5198_v9 = vpop.eup %4062 }
 0x2b7   : > { %v5200_v11 = vpop.eup %4064  ;;  %v2156_v42 = vsel %vm1888_vm3, %v5198_v9, 0.0 }
 0x2b8   : > { %v2159_v46 = vsel %vm1888_vm3, %v5200_v11, 0.0 }
 0x2b9   : > { %2160 = vadd.xlane.f32.xlu0 %v2159_v46  ;;  %2157 = vadd.xlane.f32.xlu1 %v2156_v42 }
 0x2ba   : > { %v5206_v19 = vpop.eup %4066 }
 0x2bb   : > { %v5208_v22 = vpop.eup %4068  ;;  %v2165_v28 = vsel %vm1888_vm3, %v5206_v19, 0.0 }
 0x2bc   : > { %v2162_v43 = vsel %vm1888_vm3, %v5208_v22, 0.0 }
 0x2bd   : > { %2166 = vadd.xlane.f32.xlu0 %v2165_v28  ;;  %2163 = vadd.xlane.f32.xlu1 %v2162_v43 }
 0x2be   : > { %v5214_v0 = vpop.eup %4070 }
 0x2bf   : > { %v5216_v2 = vpop.eup %4072  ;;  %v2168_v30 = vsel %vm1888_vm3, %v5214_v0, 0.0 }
 0x2c0   : > { %v2171_v59 = vsel %vm1888_vm3, %v5216_v2, 0.0 }
 0x2c1   : > { %2172 = vadd.xlane.f32.xlu0 %v2171_v59  ;;  %2169 = vadd.xlane.f32.xlu1 %v2168_v30 }
 0x2c2   : > { %v5222_v39 = vpop.eup %4074 }
 0x2c3   : > { %v2174_v49 = vsel %vm1888_vm3, %v5222_v39, 0.0 }
 0x2c5   : > { %2175 = vadd.xlane.f32.xlu1 %v2174_v49  ;;  %v5586_v49 = vpack.c.bf16 %v4757_v23, %v4746_v18  ;;  %v5588_v18 = vpack.c.bf16 %v4750_v31, %v4736_v35  ;;  %v5589_v35 = vpack.c.bf16 %v4792_v63, %v4783_v48  ;;  %v5590_v48 = vpack.c.bf16 %v4787_v16, %v4773_v14 }
 0x2c6   : > { %v5591_v14 = vpack.c.bf16 %v4827_v24, %v4816_v47  ;;  %v5592_v24 = vpack.c.bf16 %v4822_v12, %v4812_v34  ;;  %v5593_v34 = vpack.c.bf16 %v4855_v3, %v4847_v57 }
 0x2f1   : > { %v2083_v21 = vpop.xlane.xlu0 %2082 }
 0x2f2   : > { %4076 = vrcp.f32 %v2083_v21 }
 0x2f5   : > { %v2086_v58 = vpop.xlane.xlu1 %2085 }
 0x2f6   : > { %4078 = vrcp.f32 %v2086_v58  ;;  %v5587_v58 = vmov 0.0  }
 0x2f9   : > { %v2089_v20 = vpop.xlane.xlu0 %2088 }
 0x2fa   : > { %4080 = vrcp.f32 %v2089_v20 }
 0x2fd   : > { %v2092_v4 = vpop.xlane.xlu1 %2091 }
 0x2fe   : > { %4082 = vrcp.f32 %v2092_v4 }
 0x2ff   : > { %v4077_v62 = vpop.eup %4076 }
 0x300   : > { %v2209_v46 = vmul.f32 %v4077_v62, %v5071_v54 }
 0x301   : > { %v2095_v29 = vpop.xlane.xlu0 %2094 }
 0x302   : > { %4084 = vrcp.f32 %v2095_v29 }
 0x303   : > { %v4079_v42 = vpop.eup %4078 }
 0x304   : > { %v2210_v28 = vmul.f32 %v4079_v42, %v5076_v17 }
 0x305   : > { %v2098_v43 = vpop.xlane.xlu1 %2097 }
 0x306   : > { %4086 = vrcp.f32 %v2098_v43  ;;  %v2241_v30 = vpack.c.bf16 %v2210_v28, %v2209_v46 }
 0x307   : > { %v4081_v59 = vpop.eup %4080 }
 0x308   : > { %3861 = vmatmul.mubr.msk.bf16.vlgmr.msra.gmra.mxu0 %vm1888_vm3, %v2241_v30  ;;  %v2211_v54 = vmul.f32 %v4081_v59, %v5081_v26 }
 0x309   : > { %3871 = vmatpush3.bf16.msra.mxu0 %v5586_v49  ;;  %v2101_v21 = vpop.xlane.xlu0 %2100  ;;  %3872 = vmatprep.mubr.msk.bf16.mxu0 %vm4181_vm1, %v5587_v58 }
 0x30a   : > { %3882 = vmatprep.subr.bf16.mxu0 %v5587_v58  ;;  %4088 = vrcp.f32 %v2101_v21 }
 0x30b   : > { %v4083_v20 = vpop.eup %4082 }
 0x30c   : > { %v2212_v17 = vmul.f32 %v4083_v20, %v5086_v50 }
 0x30d   : > { %v2104_v4 = vpop.xlane.xlu1 %2103 }
 0x30e   : > { %4090 = vrcp.f32 %v2104_v4  ;;  %v2242_v62 = vpack.c.bf16 %v2212_v17, %v2211_v54 }
 0x30f   : > { %v4085_v29 = vpop.eup %4084 }
 0x310   : > { %3867 = vmatmul.mubr.msk.bf16.vlgmr.msra.gmra.mxu1 %vm1888_vm3, %v2242_v62  ;;  %v2213_v26 = vmul.f32 %v4085_v29, %v5091_v1 }
 0x311   : > { %3877 = vmatpush3.bf16.msra.mxu1 %v5588_v18  ;;  %v2107_v23 = vpop.xlane.xlu0 %2106  ;;  %3878 = vmatprep.mubr.msk.bf16.mxu1 %vm4181_vm1, %v5587_v58 }
 0x312   : > { %3888 = vmatprep.subr.bf16.mxu1 %v5587_v58  ;;  %4092 = vrcp.f32 %v2107_v23 }
 0x313   : > { %v4087_v42 = vpop.eup %4086 }
 0x314   : > { %v2214_v50 = vmul.f32 %v4087_v42, %v5096_v38 }
 0x315   : > { %v2110_v46 = vpop.xlane.xlu1 %2109 }
 0x316   : > { %4094 = vrcp.f32 %v2110_v46  ;;  %v2243_v28 = vpack.c.bf16 %v2214_v50, %v2213_v26 }
 0x317   : > { %v4089_v43 = vpop.eup %4088 }
 0x318   : > { %3873 = vmatmul.mubr.msk.bf16.vlgmr.msra.gmra.mxu0 %vm1888_vm3, %v2243_v28  ;;  %v2215_v1 = vmul.f32 %v4089_v43, %v5101_v52 }
 0x319   : > { %3883 = vmatpush3.bf16.msra.mxu0 %v5589_v35  ;;  %v2113_v31 = vpop.xlane.xlu0 %2112  ;;  %3884 = vmatprep.mubr.msk.bf16.mxu0 %vm4181_vm1, %v5587_v58 }
 0x31a   : > { %3894 = vmatprep.subr.bf16.mxu0 %v5587_v58  ;;  %4096 = vrcp.f32 %v2113_v31 }
 0x31b   : > { %v4091_v30 = vpop.eup %4090 }
 0x31c   : > { %v2216_v38 = vmul.f32 %v4091_v30, %v5106_v41 }
 0x31d   : > { %v2116_v59 = vpop.xlane.xlu1 %2115 }
 0x31e   : > { %4098 = vrcp.f32 %v2116_v59  ;;  %v2244_v49 = vpack.c.bf16 %v2216_v38, %v2215_v1 }
 0x31f   : > { %v4093_v21 = vpop.eup %4092 }
 0x320   : > { %3879 = vmatmul.mubr.msk.bf16.vlgmr.msra.gmra.mxu1 %vm1888_vm3, %v2244_v49  ;;  %v2217_v52 = vmul.f32 %v4093_v21, %v5111_v25  ;;  %v5594_v49 = vpack.c.bf16 %v4850_v45, %v4843_v13 }
 0x321   : > { %3889 = vmatpush3.bf16.msra.mxu1 %v5590_v48  ;;  %v2119_v63 = vpop.xlane.xlu0 %2118  ;;  %3890 = vmatprep.mubr.msk.bf16.mxu1 %vm4181_vm1, %v5587_v58 }
 0x322   : > { %3900 = vmatprep.subr.bf16.mxu1 %v5587_v58  ;;  %4100 = vrcp.f32 %v2119_v63 }
 0x323   : > { %v4095_v20 = vpop.eup %4094 }
 0x324   : > { %v2218_v41 = vmul.f32 %v4095_v20, %v5116_v53 }
 0x325   : > { %v2122_v54 = vpop.xlane.xlu1 %2121 }
 0x326   : > { %4102 = vrcp.f32 %v2122_v54  ;;  %v2245_v17 = vpack.c.bf16 %v2218_v41, %v2217_v52 }
 0x327   : > { %v4097_v4 = vpop.eup %4096 }
 0x328   : > { %3885 = vmatmul.mubr.msk.bf16.vlgmr.msra.gmra.mxu0 %vm1888_vm3, %v2245_v17  ;;  %v2219_v25 = vmul.f32 %v4097_v4, %v5121_v51 }
 0x329   : > { %3895 = vmatpush3.bf16.msra.mxu0 %v5591_v14  ;;  %v2125_v16 = vpop.xlane.xlu0 %2124  ;;  %3896 = vmatprep.mubr.msk.bf16.mxu0 %vm4181_vm1, %v5587_v58 }
 0x32a   : > { %3906 = vmatprep.subr.bf16.mxu0 %v5587_v58  ;;  %4104 = vrcp.f32 %v2125_v16 }
 0x32b   : > { %v4099_v62 = vpop.eup %4098 }
 0x32c   : > { %v2220_v53 = vmul.f32 %v4099_v62, %v5127_v40 }
 0x32d   : > { %v2131_v29 = vpop.xlane.xlu0 %2130 }
 0x32e   : > { %v2128_v18 = vpop.xlane.xlu1 %2127  ;;  %v2246_v23 = vpack.c.bf16 %v2220_v53, %v2219_v25 }
 0x32f   : > { %4106 = vrcp.f32 %v2128_v18  ;;  %v4101_v47 = vpop.eup %4100 }
 0x330   : > { %3891 = vmatmul.mubr.msk.bf16.vlgmr.msra.gmra.mxu1 %vm1888_vm3, %v2246_v23  ;;  %4108 = vrcp.f32 %v2131_v29  ;;  %v2221_v26 = vmul.f32 %v4101_v47, %v5133_v27  ;;  %v5598_v23 = vld [vmem:[#allocation7_spill] sm:$0xff] }
 0x331   : > { %3901 = vmatpush3.bf16.msra.mxu1 %v5592_v24  ;;  %3902 = vmatprep.mubr.msk.bf16.mxu1 %vm4181_vm1, %v5587_v58 }
 0x332   : > { %v2137_v42 = vpop.xlane.xlu0 %2136  ;;  %v2134_v51 = vpop.xlane.xlu1 %2133  ;;  %3912 = vmatprep.subr.bf16.mxu1 %v5587_v58 }
 0x333   : > { %v4103_v40 = vpop.eup %4102  ;;  %4110 = vrcp.f32 %v2134_v51 }
 0x334   : > { %v2222_v50 = vmul.f32 %v4103_v40, %v5139_v10  ;;  %4112 = vrcp.f32 %v2137_v42  ;;  %v5601_v40 = vld [vmem:[#allocation6_spill] sm:$0xff] }
 0x336   : > { %v2143_v46 = vpop.xlane.xlu0 %2142  ;;  %v2140_v28 = vpop.xlane.xlu1 %2139  ;;  %v2247_v43 = vpack.c.bf16 %v2222_v50, %v2221_v26  ;;  %v5602_v26 = vld [vmem:[#allocation4_spill] sm:$0xff] }
 0x337   : > { %4114 = vrcp.f32 %v2140_v28  ;;  %v4105_v12 = vpop.eup %4104  ;;  %v5603_v50 = vpack.c.bf16 %v5601_v40, %v5602_v26  ;;  %v4010_v28 = vld [vmem:[%s5561_s7 + $0x8] sm:$0xff]  }
 0x338   : > { %3897 = vmatmul.mubr.msk.bf16.vlgmr.msra.gmra.mxu0 %vm1888_vm3, %v2247_v43  ;;  %4116 = vrcp.f32 %v2143_v46  ;;  %v2223_v31 = vmul.f32 %v4105_v12, %v5145_v37  ;;  %v5604_v12 = vld [vmem:[#allocation11_spill] sm:$0xff] }
 0x339   : > { %3907 = vmatpush3.bf16.msra.mxu0 %v5593_v34  ;;  %3908 = vmatprep.mubr.msk.bf16.mxu0 %vm4181_vm1, %v5587_v58 }
 0x33a   : > { %v2149_v35 = vpop.xlane.xlu0 %2148  ;;  %v2146_v27 = vpop.xlane.xlu1 %2145  ;;  %3918 = vmatprep.subr.bf16.mxu0 %v5587_v58 }
 0x33b   : > { %4118 = vrcp.f32 %v2146_v27 }
 0x33c   : > { %v4107_v10 = vpop.eup %4106  ;;  %4120 = vrcp.f32 %v2149_v35  ;;  %v5605_v35 = vld [vmem:[#allocation9_spill] sm:$0xff] }
 0x33d   : > { %v2224_v30 = vmul.f32 %v4107_v10, %v5153_v61  ;;  %v4109_v57 = vpop.eup %4108  ;;  %v5606_v27 = vpack.c.bf16 %v5604_v12, %v5605_v35 }
 0x33e   : > { %v2155_v1 = vpop.xlane.xlu0 %2154  ;;  %v2152_v38 = vpop.xlane.xlu1 %2151  ;;  %v2225_v37 = vmul.f32 %v4109_v57, %v5151_v15 }
 0x33f   : > { %v2248_v3 = vpack.c.bf16 %v2224_v30, %v2223_v31  ;;  %4122 = vrcp.f32 %v2152_v38  ;;  %v5608_v38 = vld [vmem:[#allocation8_spill] sm:$0xff] }
 0x340   : > { %v4111_v59 = vpop.eup %4110  ;;  %4124 = vrcp.f32 %v2155_v1  ;;  %v5607_v1 = vld [vmem:[#allocation10_spill] sm:$0xff] }
 0x341   : > { %3903 = vmatmul.mubr.msk.bf16.vlgmr.msra.gmra.mxu1 %vm1888_vm3, %v2248_v3  ;;  %v2226_v61 = vmul.f32 %v4111_v59, %v5161_v32  ;;  %v4113_v63 = vpop.eup %4112  ;;  %v5595_v32 = vpack.c.bf16 %v4883_v5, %v4875_v7  ;;  %v5596_v7 = vld [vmem:[#allocation3_spill] sm:$0xff]  ;;  %v5609_v57 = vpack.c.bf16 %v5607_v1, %v5608_v38 }
 0x342   : > { %3913 = vmatpush3.bf16.msra.mxu1 %v5594_v49  ;;  %v2161_v21 = vpop.xlane.xlu0 %2160  ;;  %v2158_v48 = vpop.xlane.xlu1 %2157  ;;  %3914 = vmatprep.mubr.msk.bf16.mxu1 %vm4181_vm1, %v5587_v58  ;;  %v2227_v41 = vmul.f32 %v4113_v63, %v5163_v8  ;;  %v5597_v5 = vpack.c.bf16 %v4878_v55, %v5596_v7  ;;  %v5599_v55 = vld [vmem:[#allocation5_spill] sm:$0xff]  ;;  %v4011_v49 = vld [vmem:[%s5561_s7] sm:$0xff]  }
 0x343   : > { %3924 = vmatprep.subr.bf16.mxu1 %v5587_v58  ;;  %4126 = vrcp.f32 %v2158_v48  ;;  %v2249_v20 = vpack.c.bf16 %v2226_v61, %v2225_v37  ;;  %v5600_v47 = vpack.c.bf16 %v5598_v23, %v5599_v55 }
 0x344   : > { %v4115_v52 = vpop.eup %4114  ;;  %4128 = vrcp.f32 %v2161_v21 }
 0x345   : > { %v2228_v13 = vmul.f32 %v4115_v52, %v5173_v36  ;;  %3909 = vmatmul.mubr.msk.bf16.vlgmr.msra.gmra.mxu0 %vm1888_vm3, %v2249_v20  ;;  %v4117_v54 = vpop.eup %4116 }
 0x346   : > { %v2167_v45 = vpop.xlane.xlu0 %2166  ;;  %v2164_v15 = vpop.xlane.xlu1 %2163  ;;  %3919 = vmatpush3.bf16.msra.mxu0 %v5595_v32  ;;  %3920 = vmatprep.mubr.msk.bf16.mxu0 %vm4181_vm1, %v5587_v58  ;;  %v2229_v14 = vmul.f32 %v4117_v54, %v5171_v6 }
 0x347   : > { %v2250_v17 = vpack.c.bf16 %v2228_v13, %v2227_v41  ;;  %4130 = vrcp.f32 %v2164_v15  ;;  %3930 = vmatprep.subr.bf16.mxu0 %v5587_v58 }
 0x348   : > { %v4119_v8 = vpop.eup %4118  ;;  %4132 = vrcp.f32 %v2167_v45 }
 0x349   : > { %3915 = vmatmul.mubr.msk.bf16.vlgmr.msra.gmra.mxu1 %vm1888_vm3, %v2250_v17  ;;  %v2230_v16 = vmul.f32 %v4119_v8, %v5181_v56  ;;  %v4121_v62 = vpop.eup %4120 }
 0x34a   : > { %v2173_v36 = vpop.xlane.xlu0 %2172  ;;  %v2170_v4 = vpop.xlane.xlu1 %2169  ;;  %3925 = vmatpush3.bf16.msra.mxu1 %v5597_v5  ;;  %3926 = vmatprep.mubr.msk.bf16.mxu1 %vm4181_vm1, %v5587_v58  ;;  %v2231_v29 = vmul.f32 %v4121_v62, %v5183_v33 }
 0x34b   : > { %4134 = vrcp.f32 %v2170_v4  ;;  %v2251_v25 = vpack.c.bf16 %v2230_v16, %v2229_v14  ;;  %3936 = vmatprep.subr.bf16.mxu1 %v5587_v58 }
 0x34c   : > { %v4123_v53 = vpop.eup %4122  ;;  %4136 = vrcp.f32 %v2173_v36 }
 0x34d   : > { %v2232_v6 = vmul.f32 %v4123_v53, %v5192_v60  ;;  %3921 = vmatmul.mubr.msk.bf16.vlgmr.msra.gmra.mxu0 %vm1888_vm3, %v2251_v25  ;;  %v4125_v18 = vpop.eup %4124 }
 0x34e   : > { %v2176_v56 = vpop.xlane.xlu1 %2175  ;;  %3931 = vmatpush3.bf16.msra.mxu0 %v5600_v47  ;;  %3932 = vmatprep.mubr.msk.bf16.mxu0 %vm4181_vm1, %v5587_v58  ;;  %v2233_v33 = vmul.f32 %v4125_v18, %v5190_v44 }
 0x34f   : > { %4138 = vrcp.f32 %v2176_v56  ;;  %v2252_v24 = vpack.c.bf16 %v2232_v6, %v2231_v29  ;;  %3942 = vmatprep.subr.bf16.mxu0 %v5587_v58 }
 0x350   : > { %v4127_v42 = vpop.eup %4126 }
 0x351   : > { %3927 = vmatmul.mubr.msk.bf16.vlgmr.msra.gmra.mxu1 %vm1888_vm3, %v2252_v24  ;;  %v2234_v60 = vmul.f32 %v4127_v42, %v5198_v9  ;;  %v4129_v51 = vpop.eup %4128 }
 0x352   : > { %3937 = vmatpush3.bf16.msra.mxu1 %v5603_v50  ;;  %3938 = vmatprep.mubr.msk.bf16.mxu1 %vm4181_vm1, %v5587_v58  ;;  %v2235_v44 = vmul.f32 %v4129_v51, %v5200_v11 }
 0x353   : > { %v2253_v46 = vpack.c.bf16 %v2234_v60, %v2233_v33  ;;  %3948 = vmatprep.subr.bf16.mxu1 %v5587_v58 }
 0x354   : > { %v4131_v43 = vpop.eup %4130 }
 0x355   : > { %v2236_v9 = vmul.f32 %v4131_v43, %v5208_v22  ;;  %3933 = vmatmul.mubr.msk.bf16.vlgmr.msra.gmra.mxu0 %vm1888_vm3, %v2253_v46  ;;  %v4133_v34 = vpop.eup %4132 }
 0x356   : > { %3943 = vmatpush3.bf16.msra.mxu0 %v5606_v27  ;;  %3944 = vmatprep.mubr.msk.bf16.mxu0 %vm4181_vm1, %v5587_v58  ;;  %v2237_v11 = vmul.f32 %v4133_v34, %v5206_v19 }
 0x357   : > { %v2254_v10 = vpack.c.bf16 %v2236_v9, %v2235_v44  ;;  %3954 = vmatprep.subr.bf16.mxu0 %v4010_v28 }
 0x358   : > { %v4135_v31 = vpop.eup %4134 }
 0x359   : > { %v4137_v30 = vpop.eup %4136  ;;  %3939 = vmatmul.mubr.msk.bf16.vlgmr.msra.gmra.mxu1 %vm1888_vm3, %v2254_v10  ;;  %v2238_v22 = vmul.f32 %v4135_v31, %v5214_v0 }
 0x35a   : > { %3949 = vmatpush3.bf16.msra.mxu1 %v5609_v57  ;;  %3950 = vmatprep.mubr.msk.bf16.mxu1 %vm4181_vm1, %v5587_v58  ;;  %v2239_v21 = vmul.f32 %v4137_v30, %v5216_v2 }
 0x35b   : > { %v2255_v59 = vpack.c.bf16 %v2238_v22, %v2237_v11 }
 0x35c   : > { %v4139_v3 = vpop.eup %4138 }
 0x35d   : > { %v2240_v48 = vmul.f32 %v4139_v3, %v5222_v39  ;;  %3945 = vmatmul.mubr.msk.bf16.vlgmr.msra.gmra.mxu0 %vm1888_vm3, %v2255_v59 }
 0x35e   : > { %3955 = vmatpush3.bf16.msra.mxu0 %v4010_v28 }
 0x35f   : > { %v2256_v19 = vpack.c.bf16 %v2240_v48, %v2239_v21  ;;  %3956 = vmatprep.subr.bf16.mxu0 %v4011_v49 }
 0x361   : > { %3951 = vmatmul.mubr.msk.bf16.vlgmr.msra.gmra.mxu1 %vm1888_vm3, %v2256_v19 }
 0x362   : > { %3957 = vmatpush3.bf16.msra.mxu0 %v4011_v49 }
 0x3c8   : > { %v2294_v0 = vpop.f32.mrf.mxu0 }
 0x3ca   : > { %v3862_v58 = vpop.f32.mrf.mxu0 }
 0x3cc   : > { %v2297_v37 = vpop.f32.mrf.mxu0 }
 0x3cd   : > { %v2961_v61 = vpack.c.bf16 %v2297_v37, %v2294_v0 }
 0x3ce   : > { %v3863_v63 = vpop.f32.mrf.mxu0 }
 0x3cf   : > { %3958 = vmatprep.mubr.msk.bf16.mxu0 %vm477_vm0, %v2961_v61 }
 0x3d0   : > { %v2338_v20 = vpop.f32.mrf.mxu1 }
 0x3d2   : > { %v3868_v52 = vpop.f32.mrf.mxu1 }
 0x3d4   : > { %v2341_v2 = vpop.f32.mrf.mxu1 }
 0x3d5   : > { %v2962_v41 = vpack.c.bf16 %v2341_v2, %v2338_v20 }
 0x3d6   : > { %v3869_v39 = vpop.f32.mrf.mxu1 }
 0x3d7   : > { %3959 = vmatmul.mubr.msk.bf16.vlgmr.msra.gmra.mxu0 %vm477_vm0, %v2962_v41 }
 0x3d8   : > { %v2382_v13 = vpop.f32.mrf.mxu0 }
 0x3da   : > { %v3874_v45 = vpop.f32.mrf.mxu0 }
 0x3dc   : > { %v2385_v15 = vpop.f32.mrf.mxu0 }
 0x3dd   : > { %v2963_v54 = vpack.c.bf16 %v2385_v15, %v2382_v13 }
 0x3de   : > { %v3875_v32 = vpop.f32.mrf.mxu0 }
 0x3df   : > { %3962 = vmatprep.mubr.msk.bf16.mxu0 %vm477_vm0, %v2963_v54 }
 0x3e0   : > { %v2426_v17 = vpop.f32.mrf.mxu1 }
 0x3e2   : > { %v3880_v8 = vpop.f32.mrf.mxu1 }
 0x3e3   : > { %v5381_v8 = vld [vmem:[%s5562_s8] ss:$0 sm:$0xff] }
 0x3e4   : > { %v2429_v36 = vpop.f32.mrf.mxu1 }
 0x3e5   : > { %v2964_v4 = vpack.c.bf16 %v2429_v36, %v2426_v17 }
 0x3e6   : > { %v3881_v14 = vpop.f32.mrf.mxu1 }
 0x3e7   : > { %3963 = vmatmul.mubr.msk.bf16.gmra.mxu0 %vm477_vm0, %v2964_v4  ;;  %v5383_v4 = vstv %s3209_s14 }
 0x3e8   : > { %v2470_v16 = vpop.f32.mrf.mxu0 }
 0x3ea   : > { %v3886_v62 = vpop.f32.mrf.mxu0 }
 0x3ec   : > { %v2473_v7 = vpop.f32.mrf.mxu0 }
 0x3ed   : > { %v2965_v5 = vpack.c.bf16 %v2473_v7, %v2470_v16 }
 0x3ee   : > { %v3887_v25 = vpop.f32.mrf.mxu0 }
 0x3ef   : > { %3966 = vmatprep.mubr.msk.bf16.mxu0 %vm477_vm0, %v2965_v5  ;;  %v4140_v25 = vld [vmem:[%s4268_s30 + $0x10] sm:$0xff] }
 0x3f0   : > { %v2514_v53 = vpop.f32.mrf.mxu1 }
 0x3f2   : > { %v3892_v29 = vpop.f32.mrf.mxu1 }
 0x3f4   : > { %v2517_v6 = vpop.f32.mrf.mxu1 }
 0x3f5   : > { %v2966_v56 = vpack.c.bf16 %v2517_v6, %v2514_v53 }
 0x3f6   : > { %v3893_v18 = vpop.f32.mrf.mxu1 }
 0x3f7   : > { %3967 = vmatmul.mubr.msk.bf16.gmra.mxu0 %vm477_vm0, %v2966_v56  ;;  %v4141_v18 = vld [vmem:[%s4268_s30] sm:$0xff] }
 0x3f8   : > { %v2558_v23 = vpop.f32.mrf.mxu0 }
 0x3fa   : > { %v3898_v55 = vpop.f32.mrf.mxu0 }
 0x3fc   : > { %v2561_v47 = vpop.f32.mrf.mxu0 }
 0x3fd   : > { %v2967_v24 = vpack.c.bf16 %v2561_v47, %v2558_v23 }
 0x3fe   : > { %v3899_v42 = vpop.f32.mrf.mxu0 }
 0x3ff   : > { %3970 = vmatprep.mubr.msk.bf16.mxu0 %vm477_vm0, %v2967_v24  ;;  %v4142_v24 = vld [vmem:[%s4268_s30 + $0x18] sm:$0xff] }
 0x401   : > { %v2602_v33 = vpop.f32.mrf.mxu1 }
 0x403   : > { %v3904_v60 = vpop.f32.mrf.mxu1 }
 0x404   : > { %v4143_v60 = vld [vmem:[%s4268_s30 + $0x8] sm:$0xff] }
 0x405   : > { %v2605_v51 = vpop.f32.mrf.mxu1  ;;  %v2646_v26 = vpop.f32.mrf.mxu0 }
 0x406   : > { %v2968_v40 = vpack.c.bf16 %v2605_v51, %v2602_v33 }
 0x407   : > { %v3905_v50 = vpop.f32.mrf.mxu1  ;;  %v3910_v46 = vpop.f32.mrf.mxu0 }
 0x408   : > { %3971 = vmatmul.mubr.msk.bf16.gmra.mxu0 %vm477_vm0, %v2968_v40 }
 0x409   : > { %v2649_v28 = vpop.f32.mrf.mxu0  ;;  %v2690_v43 = vpop.f32.mrf.mxu1 }
 0x40a   : > { %v2969_v44 = vpack.c.bf16 %v2649_v28, %v2646_v26 }
 0x40b   : > { %v3911_v9 = vpop.f32.mrf.mxu0  ;;  %v3916_v34 = vpop.f32.mrf.mxu1 }
 0x40c   : > { %3974 = vmatprep.mubr.msk.bf16.mxu0 %vm477_vm0, %v2969_v44  ;;  %v4144_v44 = vld [vmem:[%s4268_s30 + $0x30] sm:$0xff] }
 0x40d   : > { %v2693_v12 = vpop.f32.mrf.mxu1  ;;  %v2734_v35 = vpop.f32.mrf.mxu0 }
 0x40e   : > { %v2970_v27 = vpack.c.bf16 %v2693_v12, %v2690_v43 }
 0x40f   : > { %v3917_v10 = vpop.f32.mrf.mxu1  ;;  %v3922_v31 = vpop.f32.mrf.mxu0 }
 0x410   : > { %3975 = vmatmul.mubr.msk.bf16.gmra.mxu0 %vm477_vm0, %v2970_v27  ;;  %v4145_v27 = vld [vmem:[%s4268_s30 + $0x20] sm:$0xff] }
 0x411   : > { %v2737_v30 = vpop.f32.mrf.mxu0  ;;  %v2778_v11 = vpop.f32.mrf.mxu1 }
 0x412   : > { %v2971_v22 = vpack.c.bf16 %v2737_v30, %v2734_v35 }
 0x413   : > { %v3923_v1 = vpop.f32.mrf.mxu0  ;;  %v3928_v38 = vpop.f32.mrf.mxu1 }
 0x414   : > { %3978 = vmatprep.mubr.msk.bf16.mxu0 %vm477_vm0, %v2971_v22  ;;  %v4147_v38 = vld [vmem:[%s4268_s30 + $0x28] sm:$0xff] }
 0x415   : > { %v2781_v57 = vpop.f32.mrf.mxu1  ;;  %v2822_v3 = vpop.f32.mrf.mxu0 }
 0x416   : > { %v2972_v59 = vpack.c.bf16 %v2781_v57, %v2778_v11  ;;  %v4146_v11 = vld [vmem:[%s4268_s30 + $0x38] sm:$0xff] }
 0x417   : > { %v3929_v49 = vpop.f32.mrf.mxu1  ;;  %v3934_v21 = vpop.f32.mrf.mxu0 }
 0x418   : > { %3979 = vmatmul.mubr.msk.bf16.gmra.mxu0 %vm477_vm0, %v2972_v59 }
 0x419   : > { %v2825_v48 = vpop.f32.mrf.mxu0  ;;  %v2866_v19 = vpop.f32.mrf.mxu1 }
 0x41a   : > { %v2973_v0 = vpack.c.bf16 %v2825_v48, %v2822_v3 }
 0x41b   : > { %v3935_v58 = vpop.f32.mrf.mxu0  ;;  %v3940_v37 = vpop.f32.mrf.mxu1 }
 0x41c   : > { %3982 = vmatprep.mubr.msk.bf16.mxu0 %vm477_vm0, %v2973_v0  ;;  %v4148_v0 = vld [vmem:[%s4268_s30 + $0x50] sm:$0xff] }
 0x41d   : > { %v2869_v61 = vpop.f32.mrf.mxu1  ;;  %v2910_v63 = vpop.f32.mrf.mxu0 }
 0x41e   : > { %v2974_v20 = vpack.c.bf16 %v2869_v61, %v2866_v19 }
 0x41f   : > { %v3941_v52 = vpop.f32.mrf.mxu1  ;;  %v3946_v2 = vpop.f32.mrf.mxu0 }
 0x420   : > { %3983 = vmatmul.mubr.msk.bf16.gmra.mxu0 %vm477_vm0, %v2974_v20  ;;  %v4149_v20 = vld [vmem:[%s4268_s30 + $0x40] sm:$0xff] }
 0x421   : > { %v2913_v41 = vpop.f32.mrf.mxu0  ;;  %v2954_v39 = vpop.f32.mrf.mxu1 }
 0x422   : > { %v2975_v13 = vpack.c.bf16 %v2913_v41, %v2910_v63 }
 0x423   : > { %v3947_v45 = vpop.f32.mrf.mxu0  ;;  %v3952_v15 = vpop.f32.mrf.mxu1 }
 0x424   : > { %3986 = vmatprep.mubr.msk.bf16.mxu0 %vm477_vm0, %v2975_v13  ;;  %v4151_v15 = vld [vmem:[%s4268_s30 + $0x48] sm:$0xff] }
 0x425   : > { %v2957_v54 = vpop.f32.mrf.mxu1 }
 0x426   : > { %v2976_v32 = vpack.c.bf16 %v2957_v54, %v2954_v39  ;;  %v4150_v39 = vld [vmem:[%s4268_s30 + $0x58] sm:$0xff] }
 0x427   : > { %v3953_v17 = vpop.f32.mrf.mxu1 }
 0x428   : > { %3987 = vmatmul.mubr.msk.bf16.gmra.mxu0 %vm477_vm0, %v2976_v32 }
 0x497   : > { %v3960_v36 = vpop.f32.mrf.mxu0 }
 0x498   : > { %v3091_v14 = vadd.f32 %v3960_v36, %v5381_v8 }
 0x499   : > { %v3082_v16 = vpop.f32.mrf.mxu0 }
 0x49a   : > { %v3213_v62 = vmul.f32 %v5383_v4, %v3091_v14  ;;  %v3083_v7 = vadd.f32 %v5381_v8, %v3082_v16 }
 0x49b   : > { %v3961_v5 = vpop.f32.mrf.mxu0 }
 0x49c   : > { %v3245_v53 = vadd.f32 %v4140_v25, %v3213_v62  ;;  %v3211_v29 = vmul.f32 %v5383_v4, %v3083_v7  ;;  %v3094_v6 = vadd.f32 %v3961_v5, %v5381_v8  ;;  %v4152_v7 = vld [vmem:[%s4268_s30 + $0x70] sm:$0xff] }
 0x49d   : > { %v3085_v56 = vpop.f32.mrf.mxu0 }
 0x49e   : > { %3277 = vst.msk [vmem:[%s5392_s20 + $0x10] sm:$0xff] %vm477_vm0, %v3245_v53  ;;  %v3243_v23 = vadd.f32 %v4141_v18, %v3211_v29  ;;  %v3214_v55 = vmul.f32 %v5383_v4, %v3094_v6  ;;  %v3086_v47 = vadd.f32 %v5381_v8, %v3085_v56  ;;  %v4153_v6 = vld [vmem:[%s4268_s30 + $0x60] sm:$0xff] }
 0x4a0   : > { %3275 = vst.msk [vmem:[%s5392_s20] sm:$0xff] %vm477_vm0, %v3243_v23  ;;  %v3246_v42 = vadd.f32 %v4142_v24, %v3214_v55  ;;  %v3212_v33 = vmul.f32 %v5383_v4, %v3086_v47  ;;  %v4154_v55 = vld [vmem:[%s4268_s30 + $0x78] sm:$0xff] }
 0x4a2   : > { %3278 = vst.msk [vmem:[%s5392_s20 + $0x18] sm:$0xff] %vm477_vm0, %v3246_v42  ;;  %v3244_v51 = vadd.f32 %v4143_v60, %v3212_v33  ;;  %v4155_v60 = vld [vmem:[%s4268_s30 + $0x68] sm:$0xff] }
 0x4a4   : > { %3276 = vst.msk [vmem:[%s5392_s20 + $0x8] sm:$0xff] %vm477_vm0, %v3244_v51 }
 0x4a7   : > { %v3964_v40 = vpop.f32.mrf.mxu0 }
 0x4a8   : > { %v3107_v26 = vadd.f32 %v3964_v40, %v5381_v8 }
 0x4a9   : > { %v3098_v50 = vpop.f32.mrf.mxu0 }
 0x4aa   : > { %v3217_v46 = vmul.f32 %v5383_v4, %v3107_v26  ;;  %v3099_v28 = vadd.f32 %v5381_v8, %v3098_v50 }
 0x4ab   : > { %v3965_v43 = vpop.f32.mrf.mxu0 }
 0x4ac   : > { %v3249_v9 = vadd.f32 %v4144_v44, %v3217_v46  ;;  %v3215_v34 = vmul.f32 %v5383_v4, %v3099_v28  ;;  %v3110_v12 = vadd.f32 %v3965_v43, %v5381_v8  ;;  %v4156_v28 = vld [vmem:[%s4268_s30 + $0x90] sm:$0xff] }
 0x4ad   : > { %v3101_v35 = vpop.f32.mrf.mxu0 }
 0x4ae   : > { %3281 = vst.msk [vmem:[%s5392_s20 + $0x30] sm:$0xff] %vm477_vm0, %v3249_v9  ;;  %v3247_v10 = vadd.f32 %v4145_v27, %v3215_v34  ;;  %v3218_v31 = vmul.f32 %v5383_v4, %v3110_v12  ;;  %v3102_v30 = vadd.f32 %v5381_v8, %v3101_v35  ;;  %v4157_v12 = vld [vmem:[%s4268_s30 + $0x80] sm:$0xff] }
 0x4b0   : > { %3279 = vst.msk [vmem:[%s5392_s20 + $0x20] sm:$0xff] %vm477_vm0, %v3247_v10  ;;  %v3250_v22 = vadd.f32 %v4146_v11, %v3218_v31  ;;  %v3216_v1 = vmul.f32 %v5383_v4, %v3102_v30  ;;  %v4158_v30 = vld [vmem:[%s4268_s30 + $0x98] sm:$0xff] }
 0x4b2   : > { %3282 = vst.msk [vmem:[%s5392_s20 + $0x38] sm:$0xff] %vm477_vm0, %v3250_v22  ;;  %v3248_v57 = vadd.f32 %v4147_v38, %v3216_v1 }
 0x4b4   : > { %3280 = vst.msk [vmem:[%s5392_s20 + $0x28] sm:$0xff] %vm477_vm0, %v3248_v57  ;;  %v4159_v57 = vld [vmem:[%s4268_s30 + $0x88] sm:$0xff] }
 0x4b7   : > { %v3968_v3 = vpop.f32.mrf.mxu0 }
 0x4b8   : > { %v3123_v59 = vadd.f32 %v3968_v3, %v5381_v8 }
 0x4b9   : > { %v3114_v49 = vpop.f32.mrf.mxu0 }
 0x4ba   : > { %v3221_v21 = vmul.f32 %v5383_v4, %v3123_v59  ;;  %v3115_v48 = vadd.f32 %v5381_v8, %v3114_v49 }
 0x4bb   : > { %v3969_v19 = vpop.f32.mrf.mxu0 }
 0x4bc   : > { %v3253_v58 = vadd.f32 %v4148_v0, %v3221_v21  ;;  %v3219_v37 = vmul.f32 %v5383_v4, %v3115_v48  ;;  %v3126_v61 = vadd.f32 %v3969_v19, %v5381_v8  ;;  %v4160_v48 = vld [vmem:[%s4268_s30 + $0xb0] sm:$0xff] }
 0x4bd   : > { %v3117_v63 = vpop.f32.mrf.mxu0 }
 0x4be   : > { %3285 = vst.msk [vmem:[%s5392_s20 + $0x50] sm:$0xff] %vm477_vm0, %v3253_v58  ;;  %v3251_v52 = vadd.f32 %v4149_v20, %v3219_v37  ;;  %v3222_v2 = vmul.f32 %v5383_v4, %v3126_v61  ;;  %v3118_v41 = vadd.f32 %v5381_v8, %v3117_v63  ;;  %v4161_v61 = vld [vmem:[%s4268_s30 + $0xa0] sm:$0xff] }
 0x4c0   : > { %3283 = vst.msk [vmem:[%s5392_s20 + $0x40] sm:$0xff] %vm477_vm0, %v3251_v52  ;;  %v3254_v13 = vadd.f32 %v4150_v39, %v3222_v2  ;;  %v3220_v45 = vmul.f32 %v5383_v4, %v3118_v41  ;;  %v4162_v41 = vld [vmem:[%s4268_s30 + $0xb8] sm:$0xff] }
 0x4c2   : > { %3286 = vst.msk [vmem:[%s5392_s20 + $0x58] sm:$0xff] %vm477_vm0, %v3254_v13  ;;  %v3252_v54 = vadd.f32 %v4151_v15, %v3220_v45 }
 0x4c4   : > { %3284 = vst.msk [vmem:[%s5392_s20 + $0x48] sm:$0xff] %vm477_vm0, %v3252_v54  ;;  %v4163_v54 = vld [vmem:[%s4268_s30 + $0xa8] sm:$0xff] }
 0x4c8   : > { %v3972_v32 = vpop.f32.mrf.mxu0 }
 0x4c9   : > { %v3139_v17 = vadd.f32 %v3972_v32, %v5381_v8 }
 0x4ca   : > { %v3130_v36 = vpop.f32.mrf.mxu0 }
 0x4cb   : > { %v3225_v14 = vmul.f32 %v5383_v4, %v3139_v17  ;;  %v3131_v16 = vadd.f32 %v5381_v8, %v3130_v36 }
 0x4cc   : > { %v3973_v62 = vpop.f32.mrf.mxu0 }
 0x4cd   : > { %v3257_v5 = vadd.f32 %v4152_v7, %v3225_v14  ;;  %v3223_v25 = vmul.f32 %v5383_v4, %v3131_v16  ;;  %v3142_v53 = vadd.f32 %v3973_v62, %v5381_v8  ;;  %v4164_v16 = vld [vmem:[%s4268_s30 + $0xd0] sm:$0xff] }
 0x4ce   : > { %v3133_v29 = vpop.f32.mrf.mxu0 }
 0x4cf   : > { %3289 = vst.msk [vmem:[%s5392_s20 + $0x70] sm:$0xff] %vm477_vm0, %v3257_v5  ;;  %v3255_v56 = vadd.f32 %v4153_v6, %v3223_v25  ;;  %v3226_v18 = vmul.f32 %v5383_v4, %v3142_v53  ;;  %v3134_v23 = vadd.f32 %v5381_v8, %v3133_v29  ;;  %v4165_v53 = vld [vmem:[%s4268_s30 + $0xc0] sm:$0xff] }
 0x4d0   : > { %v3976_v42 = vpop.f32.mrf.mxu0 }
 0x4d1   : > { %3287 = vst.msk [vmem:[%s5392_s20 + $0x60] sm:$0xff] %vm477_vm0, %v3255_v56  ;;  %v3258_v47 = vadd.f32 %v4154_v55, %v3226_v18  ;;  %v3224_v24 = vmul.f32 %v5383_v4, %v3134_v23  ;;  %v3155_v33 = vadd.f32 %v3976_v42, %v5381_v8  ;;  %v4166_v23 = vld [vmem:[%s4268_s30 + $0xd8] sm:$0xff] }
 0x4d2   : > { %v3146_v40 = vpop.f32.mrf.mxu0 }
 0x4d3   : > { %3290 = vst.msk [vmem:[%s5392_s20 + $0x78] sm:$0xff] %vm477_vm0, %v3258_v47  ;;  %v3256_v51 = vadd.f32 %v4155_v60, %v3224_v24  ;;  %v3229_v26 = vmul.f32 %v5383_v4, %v3155_v33  ;;  %v3147_v50 = vadd.f32 %v5381_v8, %v3146_v40  ;;  %v4167_v33 = vld [vmem:[%s4268_s30 + $0xc8] sm:$0xff] }
 0x4d4   : > { %v3977_v46 = vpop.f32.mrf.mxu0 }
 0x4d5   : > { %3288 = vst.msk [vmem:[%s5392_s20 + $0x68] sm:$0xff] %vm477_vm0, %v3256_v51  ;;  %v3261_v43 = vadd.f32 %v4156_v28, %v3229_v26  ;;  %v3227_v44 = vmul.f32 %v5383_v4, %v3147_v50  ;;  %v3158_v9 = vadd.f32 %v3977_v46, %v5381_v8  ;;  %v4168_v50 = vld [vmem:[%s4268_s30 + $0xf0] sm:$0xff] }
 0x4d6   : > { %v3149_v34 = vpop.f32.mrf.mxu0 }
 0x4d7   : > { %3293 = vst.msk [vmem:[%s5392_s20 + $0x90] sm:$0xff] %vm477_vm0, %v3261_v43  ;;  %v3259_v35 = vadd.f32 %v4157_v12, %v3227_v44  ;;  %v3230_v27 = vmul.f32 %v5383_v4, %v3158_v9  ;;  %v3150_v10 = vadd.f32 %v5381_v8, %v3149_v34  ;;  %v4169_v9 = vld [vmem:[%s4268_s30 + $0xe0] sm:$0xff] }
 0x4d8   : > { %v3980_v31 = vpop.f32.mrf.mxu0 }
 0x4d9   : > { %3291 = vst.msk [vmem:[%s5392_s20 + $0x80] sm:$0xff] %vm477_vm0, %v3259_v35  ;;  %v3262_v11 = vadd.f32 %v4158_v30, %v3230_v27  ;;  %v3228_v22 = vmul.f32 %v5383_v4, %v3150_v10  ;;  %v3171_v1 = vadd.f32 %v3980_v31, %v5381_v8  ;;  %v4170_v27 = vld [vmem:[%s4268_s30 + $0xf8] sm:$0xff]  ;;  %v4171_v30 = vld [vmem:[%s4268_s30 + $0xe8] sm:$0xff] }
 0x4da   : > { %v3162_v38 = vpop.f32.mrf.mxu0 }
 0x4db   : > { %3294 = vst.msk [vmem:[%s5392_s20 + $0x98] sm:$0xff] %vm477_vm0, %v3262_v11  ;;  %v3260_v3 = vadd.f32 %v4159_v57, %v3228_v22  ;;  %v3233_v59 = vmul.f32 %v5383_v4, %v3171_v1  ;;  %v3163_v49 = vadd.f32 %v5381_v8, %v3162_v38 }
 0x4dc   : > { %v3981_v21 = vpop.f32.mrf.mxu0 }
 0x4dd   : > { %3292 = vst.msk [vmem:[%s5392_s20 + $0x88] sm:$0xff] %vm477_vm0, %v3260_v3  ;;  %v3265_v19 = vadd.f32 %v4160_v48, %v3233_v59  ;;  %v3231_v0 = vmul.f32 %v5383_v4, %v3163_v49  ;;  %v3174_v58 = vadd.f32 %v3981_v21, %v5381_v8 }
 0x4de   : > { %v3165_v37 = vpop.f32.mrf.mxu0 }
 0x4df   : > { %3297 = vst.msk [vmem:[%s5392_s20 + $0xb0] sm:$0xff] %vm477_vm0, %v3265_v19  ;;  %v3263_v63 = vadd.f32 %v4161_v61, %v3231_v0  ;;  %v3234_v20 = vmul.f32 %v5383_v4, %v3174_v58  ;;  %v3166_v52 = vadd.f32 %v5381_v8, %v3165_v37 }
 0x4e0   : > { %v3984_v2 = vpop.f32.mrf.mxu0 }
 0x4e1   : > { %3295 = vst.msk [vmem:[%s5392_s20 + $0xa0] sm:$0xff] %vm477_vm0, %v3263_v63  ;;  %v3266_v39 = vadd.f32 %v4162_v41, %v3234_v20  ;;  %v3232_v13 = vmul.f32 %v5383_v4, %v3166_v52  ;;  %v3187_v45 = vadd.f32 %v3984_v2, %v5381_v8 }
 0x4e2   : > { %v3178_v15 = vpop.f32.mrf.mxu0 }
 0x4e3   : > { %3298 = vst.msk [vmem:[%s5392_s20 + $0xb8] sm:$0xff] %vm477_vm0, %v3266_v39  ;;  %v3264_v32 = vadd.f32 %v4163_v54, %v3232_v13  ;;  %v3237_v17 = vmul.f32 %v5383_v4, %v3187_v45  ;;  %v3179_v36 = vadd.f32 %v5381_v8, %v3178_v15 }
 0x4e4   : > { %v3985_v14 = vpop.f32.mrf.mxu0 }
 0x4e5   : > { %3296 = vst.msk [vmem:[%s5392_s20 + $0xa8] sm:$0xff] %vm477_vm0, %v3264_v32  ;;  %v3269_v62 = vadd.f32 %v4164_v16, %v3237_v17  ;;  %v3235_v7 = vmul.f32 %v5383_v4, %v3179_v36  ;;  %v3190_v5 = vadd.f32 %v3985_v14, %v5381_v8 }
 0x4e6   : > { %v3181_v25 = vpop.f32.mrf.mxu0 }
 0x4e7   : > { %3301 = vst.msk [vmem:[%s5392_s20 + $0xd0] sm:$0xff] %vm477_vm0, %v3269_v62  ;;  %v3267_v29 = vadd.f32 %v4165_v53, %v3235_v7  ;;  %v3238_v6 = vmul.f32 %v5383_v4, %v3190_v5  ;;  %v3182_v56 = vadd.f32 %v5381_v8, %v3181_v25 }
 0x4e8   : > { %v3988_v18 = vpop.f32.mrf.mxu0 }
 0x4e9   : > { %3299 = vst.msk [vmem:[%s5392_s20 + $0xc0] sm:$0xff] %vm477_vm0, %v3267_v29  ;;  %v3270_v55 = vadd.f32 %v4166_v23, %v3238_v6  ;;  %v3236_v47 = vmul.f32 %v5383_v4, %v3182_v56  ;;  %v3203_v24 = vadd.f32 %v3988_v18, %v5381_v8 }
 0x4ea   : > { %v3194_v42 = vpop.f32.mrf.mxu0 }
 0x4eb   : > { %3302 = vst.msk [vmem:[%s5392_s20 + $0xd8] sm:$0xff] %vm477_vm0, %v3270_v55  ;;  %v3268_v60 = vadd.f32 %v4167_v33, %v3236_v47  ;;  %v3241_v51 = vmul.f32 %v5383_v4, %v3203_v24  ;;  %v3195_v40 = vadd.f32 %v5381_v8, %v3194_v42 }
 0x4ec   : > { %v3989_v26 = vpop.f32.mrf.mxu0 }
 0x4ed   : > { %3300 = vst.msk [vmem:[%s5392_s20 + $0xc8] sm:$0xff] %vm477_vm0, %v3268_v60  ;;  %v3273_v46 = vadd.f32 %v4168_v50, %v3241_v51  ;;  %v3239_v28 = vmul.f32 %v5383_v4, %v3195_v40  ;;  %v3206_v43 = vadd.f32 %v3989_v26, %v5381_v8 }
 0x4ee   : > { %v3197_v44 = vpop.f32.mrf.mxu0 }
 0x4ef   : > { %3305 = vst.msk [vmem:[%s5392_s20 + $0xf0] sm:$0xff] %vm477_vm0, %v3273_v46  ;;  %v3271_v34 = vadd.f32 %v4169_v9, %v3239_v28  ;;  %v3242_v12 = vmul.f32 %v5383_v4, %v3206_v43  ;;  %v3198_v35 = vadd.f32 %v5381_v8, %v3197_v44 }
 0x4f1   : > { %3303 = vst.msk [vmem:[%s5392_s20 + $0xe0] sm:$0xff] %vm477_vm0, %v3271_v34  ;;  %v3274_v10 = vadd.f32 %v4170_v27, %v3242_v12  ;;  %v3240_v31 = vmul.f32 %v5383_v4, %v3198_v35 }
 0x4f3   : > { %3306 = vst.msk [vmem:[%s5392_s20 + $0xf8] sm:$0xff] %vm477_vm0, %v3274_v10  ;;  %v3272_v11 = vadd.f32 %v4171_v30, %v3240_v31 }
 0x4f5   : > { %3304 = vst.msk [vmem:[%s5392_s20 + $0xe8] sm:$0xff] %vm477_vm0, %v3272_v11 }
 0x4f6 PF: > { %s23_s19 = sadd.s32 1, %s4178_s19  }
 0x4f7   : > { %p20_p4 = scmp.ge.s32.totalorder %s23_s19, 4  }
 0x4f9   :  { %22 = sbr.rel (!%p20_p4) target bundleno = 2 (0x2), region = 102 }

</bundles_post_ra>
